<compile_context>
chip_gen: v5e
topology: v5e:2x2
jax: 0.10.0
libtpu: 0.0.40
codegen_flags: <defaults>
</compile_context>

<pallas_src>
import functools

import numpy as np
import jax
import jax.numpy as jnp
from jax.experimental import pallas as pl
from jax.experimental.pallas import tpu as pltpu

try:  # prefer scipy's C implementation when present
    from scipy.optimize import linear_sum_assignment as _scipy_lsa
except Exception:  # pragma: no cover - fallback below
    _scipy_lsa = None

_LANE = 128      # lane width: pad G to a multiple of this (lane-dense output)
_SUBLANE = 8     # sublane: pad Q to a multiple of this
_VMEM_BLOCK_BUDGET = 8 << 20   # bytes for (double-buffered) blocks; safe on all chips


def _round_up(x, m):
    return ((x + m - 1) // m) * m


def _pow_const(x, g: float):
    # g is a trace-time Python constant (focal gamma)
    g = float(g)
    if g == 2.0:
        return x * x
    if g == 1.0:
        return x
    return jnp.power(x, jnp.float32(g))


# ----------------------------------------------------------------------------
# Pallas kernel: one (image, query-tile) block of the bipartite matching cost
# ----------------------------------------------------------------------------
def _cost_kernel(logits_ref, onehot_t_ref, pboxes_ref, gboxes_t_ref, cost_ref, *,
                 w_class: float, w_bbox: float, w_giou: float,
                 focal_alpha: float, focal_gamma: float):
    eps = jnp.float32(1e-6)

    # ---- focal classification cost (gather-first) ------------------------------
    # Each one-hot column has a single 1.0, so the matmul selects the logit at
    # the gt label; the elementwise focal math commutes with the gather and now
    # runs on [tq, Gpad] instead of [tq, C].
    logits = logits_ref[...].astype(jnp.float32)                  # [tq, C]
    onehot = onehot_t_ref[...].astype(jnp.float32)                # [C, Gpad] (bf16 0/1 -> exact f32)
    z = jnp.dot(logits, onehot, preferred_element_type=jnp.float32)   # [tq, Gpad]
    p = jax.nn.sigmoid(z)
    neg_cost = -(1.0 - focal_alpha) * _pow_const(p, focal_gamma) * jnp.log(1.0 - p + eps)
    pos_cost = -focal_alpha * _pow_const(1.0 - p, focal_gamma) * jnp.log(p + eps)
    cost_class = pos_cost - neg_cost                              # [tq, Gpad]

    # ---- per-coordinate broadcast helpers ---------------------------------------
    pb = pboxes_ref[...].astype(jnp.float32)                      # [tq, 4]
    gb = gboxes_t_ref[...].astype(jnp.float32)                    # [4, Gpad]
    pcx, pcy, pw, ph = pb[:, 0:1], pb[:, 1:2], pb[:, 2:3], pb[:, 3:4]   # each [tq, 1]
    gcx, gcy, gw, gh = gb[0:1, :], gb[1:2, :], gb[2:3, :], gb[3:4, :]   # each [1, Gpad]

    # ---- L1 bbox cost (cdist p=1 on cxcywh) --------------------------------------
    cost_bbox = (jnp.abs(pcx - gcx) + jnp.abs(pcy - gcy) +
                 jnp.abs(pw - gw) + jnp.abs(ph - gh))             # [tq, Gpad]

    # ---- generalized IoU cost (cxcywh -> xyxy) -----------------------------------
    px0, px1 = pcx - 0.5 * pw, pcx + 0.5 * pw
    py0, py1 = pcy - 0.5 * ph, pcy + 0.5 * ph
    gx0, gx1 = gcx - 0.5 * gw, gcx + 0.5 * gw
    gy0, gy1 = gcy - 0.5 * gh, gcy + 0.5 * gh

    area_p = (px1 - px0) * (py1 - py0)                            # [tq, 1]
    area_g = (gx1 - gx0) * (gy1 - gy0)                            # [1, Gpad]

    inter_w = jnp.maximum(jnp.minimum(px1, gx1) - jnp.maximum(px0, gx0), 0.0)
    inter_h = jnp.maximum(jnp.minimum(py1, gy1) - jnp.maximum(py0, gy0), 0.0)
    inter = inter_w * inter_h                                     # [tq, Gpad]
    union = area_p + area_g - inter
    iou = inter * pl.reciprocal(union, approx=True)               # EUP vrcp (free slot)

    enc_w = jnp.maximum(jnp.maximum(px1, gx1) - jnp.minimum(px0, gx0), 0.0)
    enc_h = jnp.maximum(jnp.maximum(py1, gy1) - jnp.minimum(py0, gy0), 0.0)
    enc = enc_w * enc_h
    giou = iou - (enc - union) * pl.reciprocal(enc, approx=True)
    cost_giou = -giou                                             # [tq, Gpad]

    cost_ref[...] = (w_bbox * cost_bbox + w_class * cost_class +
                     w_giou * cost_giou).astype(cost_ref.dtype)


@functools.lru_cache(maxsize=None)
def _build_cost_call(B, Qpad, C, Gpad, tq,
                     cost_class, cost_bbox, cost_giou, focal_alpha, focal_gamma):
    kernel = functools.partial(
        _cost_kernel,
        w_class=float(cost_class), w_bbox=float(cost_bbox), w_giou=float(cost_giou),
        focal_alpha=float(focal_alpha), focal_gamma=float(focal_gamma))

    grid = (B, Qpad // tq)
    in_specs = [
        pl.BlockSpec((None, tq, C),   lambda b, qi: (b, qi, 0)),   # pred_logits  [B,Qpad,C]  f32
        pl.BlockSpec((None, C, Gpad), lambda b, qi: (b, 0, 0)),    # onehot_t     [B,C,Gpad]  bf16
        pl.BlockSpec((None, tq, 4),   lambda b, qi: (b, qi, 0)),   # pred_boxes   [B,Qpad,4]  f32
        pl.BlockSpec((None, 4, Gpad), lambda b, qi: (b, 0, 0)),    # gt boxes^T   [B,4,Gpad]  f32
    ]
    out_specs = pl.BlockSpec((None, tq, Gpad), lambda b, qi: (b, qi, 0))

    # explicit scoped-VMEM cap (double-buffered blocks + headroom); safe on
    # v5e (16 MiB default scoped), v6e (32 MiB) and v7x (64 MiB physical per TC)
    blk_bytes = (tq * C * 4 + C * Gpad * 2 + tq * 4 * 4 + 4 * Gpad * 4 + tq * Gpad * 4)
    vmem_limit = int(min(max(4 * blk_bytes + (4 << 20), 16 << 20), 64 << 20))

    return pl.pallas_call(
        kernel,
        out_shape=jax.ShapeDtypeStruct((B, Qpad, Gpad), jnp.float32),
        grid=grid,
        in_specs=in_specs,
        out_specs=out_specs,
        compiler_params=pltpu.CompilerParams(
            dimension_semantics=("parallel", "parallel"),
            vmem_limit_bytes=vmem_limit),
    )


# ----------------------------------------------------------------------------
# Host-side padding / layout prep
# ----------------------------------------------------------------------------
def _choose_q_tiling(Q, C, Gpad):
    """Largest query tile whose double-buffered blocks fit the VMEM budget."""
    def blk_bytes(t):
        return t * C * 4 + t * Gpad * 4 + t * 4 * 4 + C * Gpad * 2 + 4 * Gpad * 4

    Qpad = _round_up(Q, _SUBLANE)
    if 2 * blk_bytes(Qpad) <= _VMEM_BLOCK_BUDGET:
        return Qpad, Qpad                                   # single block covers all queries
    for tq in (2048, 1024, 512, 256, 128, 64, 32, 16, 8):
        if 2 * blk_bytes(tq) <= _VMEM_BLOCK_BUDGET:
            return _round_up(Q, tq), tq
    return _round_up(Q, _SUBLANE), _SUBLANE


def _prepare_inputs(pred_boxes_b, pred_logits_b, gt_boxes_list, gt_labels_list):
    pred_boxes_b = np.asarray(pred_boxes_b, np.float32)
    pred_logits_b = np.asarray(pred_logits_b, np.float32)
    B, Q, C = pred_logits_b.shape
    g_counts = [int(np.asarray(l).shape[0]) for l in gt_labels_list]
    Gmax = max(g_counts) if g_counts else 0
    Gpad = _round_up(max(Gmax, 1), _LANE)
    Qpad, tq = _choose_q_tiling(Q, C, Gpad)

    dummy_box = np.array([0.5, 0.5, 1.0, 1.0], np.float32)   # non-degenerate padding

    logits_p = np.zeros((B, Qpad, C), np.float32)
    logits_p[:, :Q, :] = pred_logits_b
    pboxes_p = np.tile(dummy_box, (B, Qpad, 1))
    pboxes_p[:, :Q, :] = pred_boxes_b

    onehot_t = np.zeros((B, C, Gpad), np.float32)             # padded gt columns stay all-zero
    gboxes_t = np.tile(dummy_box[:, None], (B, 1, Gpad))      # [B, 4, Gpad], coord-major
    for i in range(B):
        gi = g_counts[i]
        if gi:
            lab = np.asarray(gt_labels_list[i], np.int64)
            onehot_t[i, lab, np.arange(gi)] = 1.0
            gboxes_t[i, :, :gi] = np.asarray(gt_boxes_list[i], np.float32).T

    return (jnp.asarray(logits_p),
            jnp.asarray(onehot_t, jnp.bfloat16),              # 0/1 are exact in bf16
            jnp.asarray(pboxes_p),
            jnp.asarray(gboxes_t),
            Qpad, Gpad, tq, g_counts)


# ----------------------------------------------------------------------------
# Host-side Hungarian solve (glue; sequential LSA has no Pallas equivalent)
# ----------------------------------------------------------------------------
def _hungarian_rows_le_cols(cost):
    """Hungarian with potentials, numpy-vectorized inner loop.
    cost: [n, m] with n <= m. Returns p: p[j] is the 1-based row assigned to
    column j (0 = unassigned), j in 1..m."""
    n, m = cost.shape
    u = np.zeros(n + 1, np.float64)
    v = np.zeros(m + 1, np.float64)
    p = np.zeros(m + 1, np.int64)
    way = np.zeros(m + 1, np.int64)
    cols = np.arange(m + 1)
    for i in range(1, n + 1):
        p[0] = i
        j0 = 0
        minv = np.full(m + 1, np.inf)
        used = np.zeros(m + 1, bool)
        while True:
            used[j0] = True
            i0 = p[j0]
            free = ~used
            free[0] = False
            jf = cols[free]
            cur = cost[i0 - 1, jf - 1] - u[i0] - v[jf]
            upd = cur < minv[jf]
            minv[jf] = np.where(upd, cur, minv[jf])
            way[jf] = np.where(upd, j0, way[jf])
            k = int(np.argmin(minv[jf]))
            delta = minv[jf][k]
            j1 = int(jf[k])
            u[p[used]] += delta
            v[used] -= delta
            minv[free] -= delta
            j0 = j1
            if p[j0] == 0:
                break
        while True:
            j1 = way[j0]
            p[j0] = p[j1]
            j0 = j1
            if j0 == 0:
                break
    return p


def linear_sum_assignment_np(cost):
    """scipy.optimize.linear_sum_assignment if available, numpy fallback otherwise."""
    cost = np.asarray(cost, np.float64)
    R, C = cost.shape
    if R == 0 or C == 0:
        return np.zeros((0,), np.int64), np.zeros((0,), np.int64)
    if _scipy_lsa is not None:
        r, c = _scipy_lsa(cost)
        return np.asarray(r, np.int64), np.asarray(c, np.int64)
    if R <= C:
        p = _hungarian_rows_le_cols(cost)
        pairs = [(p[j] - 1, j - 1) for j in range(1, C + 1) if p[j] != 0]
    else:
        p = _hungarian_rows_le_cols(cost.T)
        pairs = [(j - 1, p[j] - 1) for j in range(1, R + 1) if p[j] != 0]
    pairs.sort()
    row_ind = np.array([r for r, _ in pairs], np.int64)
    col_ind = np.array([c for _, c in pairs], np.int64)
    return row_ind, col_ind


def _solve_indices(cost_np, *, mixed_match, gt_copy):
    """Per-image assignment mirroring HungarianMatcher.forward on one cost matrix."""
    if not mixed_match:
        return linear_sum_assignment_np(cost_np)
    # Align-DETR mixed assignment: repeat columns, solve, fold back and sort by tgt.
    gt_size = cost_np.shape[-1]
    num_queries = cost_np.shape[0]
    copies = min(int(num_queries * 0.5 / gt_size), gt_copy) if gt_size > 0 else gt_copy
    c_rep = np.tile(cost_np, (1, copies)) if copies > 0 else cost_np[:, :0]
    src_ind, tgt_ind = linear_sum_assignment_np(c_rep)
    tgt_ind = (tgt_ind % gt_size) if gt_size > 0 else tgt_ind
    order = np.argsort(tgt_ind, kind="stable")
    return src_ind[order].astype(np.int64), tgt_ind[order].astype(np.int64)


# ----------------------------------------------------------------------------
# HungarianMatcher forward
# ----------------------------------------------------------------------------
def hungarian_matcher_forward_batched(pred_boxes_b, pred_logits_b,
                                      gt_boxes_list, gt_labels_list, *,
                                      cost_class=1.0, cost_bbox=1.0, cost_giou=1.0,
                                      focal_alpha=0.25, focal_gamma=2.0,
                                      mixed_match=False, gt_copy=1):
    """Batched matcher: one Pallas call over all images, one batched D2H transfer,
    then per-image Hungarian solves on the host."""
    pred_logits_b = np.asarray(pred_logits_b, np.float32)
    B, Q, C = pred_logits_b.shape
    (logits_p, onehot_t, pboxes_p, gboxes_t,
     Qpad, Gpad, tq, g_counts) = _prepare_inputs(pred_boxes_b, pred_logits_b,
                                                 gt_boxes_list, gt_labels_list)

    call = _build_cost_call(B, Qpad, C, Gpad, tq,
                            float(cost_class), float(cost_bbox), float(cost_giou),
                            float(focal_alpha), float(focal_gamma))
    cost_pad = call(logits_p, onehot_t, pboxes_p, gboxes_t)       # [B, Qpad, Gpad]
    cost_np = np.asarray(jax.device_get(cost_pad))                # single batched D2H

    indices, costs = [], []
    for i in range(B):
        gi = g_counts[i]
        ci = cost_np[i, :Q, :gi]
        costs.append(ci)
        indices.append(_solve_indices(ci, mixed_match=mixed_match, gt_copy=gt_copy))
    return indices, costs


def hungarian_matcher_forward(pred_boxes, pred_logits, gt_boxes, gt_labels, *,
                              cost_class=1.0, cost_bbox=1.0, cost_giou=1.0,
                              focal_alpha=0.25, focal_gamma=2.0,
                              mixed_match=False, gt_copy=1):
    """Single-image forward mirroring HungarianMatcher.forward."""
    indices, costs = hungarian_matcher_forward_batched(
        np.asarray(pred_boxes)[None], np.asarray(pred_logits)[None],
        [np.asarray(gt_boxes)], [np.asarray(gt_labels)],
        cost_class=cost_class, cost_bbox=cost_bbox, cost_giou=cost_giou,
        focal_alpha=focal_alpha, focal_gamma=focal_gamma,
        mixed_match=mixed_match, gt_copy=gt_copy)
    src, tgt = indices[0]
    return jnp.asarray(src), jnp.asarray(tgt), costs[0]


# ----------------------------------------------------------------------------
# Pure-JAX reference for the cost matrix (mirrors the torch code)
# ----------------------------------------------------------------------------
def _ref_cost(pred_boxes, pred_logits, gt_boxes, gt_labels,
              w_class=1.0, w_bbox=1.0, w_giou=1.0, alpha=0.25, gamma=2.0):
    p = jax.nn.sigmoid(pred_logits.astype(jnp.float32))
    neg = -(1 - alpha) * (p ** gamma) * jnp.log(1 - p + 1e-6)
    pos = -alpha * ((1 - p) ** gamma) * jnp.log(p + 1e-6)
    cost_class = pos[:, gt_labels] - neg[:, gt_labels]

    cost_bbox = jnp.sum(jnp.abs(pred_boxes[:, None, :] - gt_boxes[None, :, :]), axis=-1)

    def to_xyxy(b):
        cx, cy, w, h = b[:, 0], b[:, 1], b[:, 2], b[:, 3]
        return jnp.stack([cx - 0.5 * w, cy - 0.5 * h, cx + 0.5 * w, cy + 0.5 * h], axis=-1)

    b1, b2 = to_xyxy(pred_boxes), to_xyxy(gt_boxes)
    a1 = (b1[:, 2] - b1[:, 0]) * (b1[:, 3] - b1[:, 1])
    a2 = (b2[:, 2] - b2[:, 0]) * (b2[:, 3] - b2[:, 1])
    lt = jnp.maximum(b1[:, None, :2], b2[None, :, :2])
    rb = jnp.minimum(b1[:, None, 2:], b2[None, :, 2:])
    wh = jnp.clip(rb - lt, 0)
    inter = wh[..., 0] * wh[..., 1]
    union = a1[:, None] + a2[None, :] - inter
    iou = inter / union
    lt2 = jnp.minimum(b1[:, None, :2], b2[None, :, :2])
    rb2 = jnp.maximum(b1[:, None, 2:], b2[None, :, 2:])
    wh2 = jnp.clip(rb2 - lt2, 0)
    enc = wh2[..., 0] * wh2[..., 1]
    giou = iou - (enc - union) / enc
    cost_giou = -giou

    return w_bbox * cost_bbox + w_class * cost_class + w_giou * cost_giou


if __name__ == "__main__":
    key = jax.random.PRNGKey(0)
    B, Q, C = 2, 64, 32          # batch, num_queries, num_classes
    G_list = [8, 5]              # gt objects per image

    ks = jax.random.split(key, 4)
    p_cxcy = jax.random.uniform(ks[0], (B, Q, 2), minval=0.2, maxval=0.8)
    p_wh = jax.random.uniform(ks[1], (B, Q, 2), minval=0.05, maxval=0.3)
    pred_boxes = jnp.concatenate([p_cxcy, p_wh], axis=-1).astype(jnp.float32)
    pred_logits = jax.random.normal(ks[2], (B, Q, C), dtype=jnp.float32)

    gt_boxes_list, gt_labels_list = [], []
    for i, G in enumerate(G_list):
        kb, kw, kl = jax.random.split(jax.random.fold_in(ks[3], i), 3)
        g_cxcy = jax.random.uniform(kb, (G, 2), minval=0.2, maxval=0.8)
        g_wh = jax.random.uniform(kw, (G, 2), minval=0.05, maxval=0.3)
        gt_boxes_list.append(np.asarray(jnp.concatenate([g_cxcy, g_wh], axis=-1), np.float32))
        gt_labels_list.append(np.asarray(jax.random.randint(kl, (G,), 0, C, dtype=jnp.int32)))

    # batched forward: one Pallas call, one D2H, per-image Hungarian on host
    indices, costs = hungarian_matcher_forward_batched(
        np.asarray(pred_boxes), np.asarray(pred_logits), gt_boxes_list, gt_labels_list)

    # correctness: Pallas cost matrices vs pure-JAX reference (tolerance covers
    # the approximate-reciprocal GIoU path)
    for i, G in enumerate(G_list):
        ref = _ref_cost(pred_boxes[i], pred_logits[i],
                        jnp.asarray(gt_boxes_list[i]), jnp.asarray(gt_labels_list[i]))
        np.testing.assert_allclose(costs[i], np.asarray(ref), rtol=1e-2, atol=1e-2)
        src, tgt = indices[i]
        assert src.shape == (G,) and tgt.shape == (G,)
        assert len(set(src.tolist())) == G                    # distinct queries
        assert sorted(tgt.tolist()) == list(range(G))         # every gt matched

    # single-image API mirroring the torch module's forward() (mixed_match=False)
    src0, tgt0, _ = hungarian_matcher_forward(
        pred_boxes[0], pred_logits[0], gt_boxes_list[0], gt_labels_list[0])
    jax.block_until_ready((src0, tgt0))
    assert src0.shape == (G_list[0],) and tgt0.shape == (G_list[0],)

    # Align-DETR mixed-match path (gt columns repeated, indices folded + sorted)
    src_m, tgt_m, _ = hungarian_matcher_forward(
        pred_boxes[0], pred_logits[0], gt_boxes_list[0], gt_labels_list[0],
        mixed_match=True, gt_copy=2)
    copies = min(int(Q * 0.5 / G_list[0]), 2)
    assert src_m.shape == (G_list[0] * copies,) and tgt_m.shape == (G_list[0] * copies,)
    assert bool(jnp.all(tgt_m[1:] >= tgt_m[:-1]))             # sorted by target index
    assert len(set(np.asarray(src_m).tolist())) == src_m.shape[0]   # distinct queries

    print("KERNEL_OK")
</pallas_src>

<mosaic_0001>
module attributes {stable_mosaic.version = 11 : i64} {
  func.func @_cost_kernel(%arg0: i32, %arg1: i32, %arg2: memref<1x64x32xf32, #tpu.memory_space<vmem>>, %arg3: memref<1x32x128xbf16, #tpu.memory_space<vmem>>, %arg4: memref<1x64x4xf32, #tpu.memory_space<vmem>>, %arg5: memref<1x4x128xf32, #tpu.memory_space<vmem>>, %arg6: memref<1x64x128xf32, #tpu.memory_space<vmem>>) attributes {dimension_semantics = [#tpu.dimension_semantics<parallel>, #tpu.dimension_semantics<parallel>], iteration_bounds = array<i64: 2, 1>, scalar_prefetch = 0 : i64, scratch_operands = 0 : i64, tpu.core_type = #tpu.core_type<tc>, window_params = [{transform_indices = @transform_0, window_bounds = array<i64: 1, 64, 32>}, {transform_indices = @transform_1, window_bounds = array<i64: 1, 32, 128>}, {transform_indices = @transform_2, window_bounds = array<i64: 1, 64, 4>}, {transform_indices = @transform_3, window_bounds = array<i64: 1, 4, 128>}, {transform_indices = @transform_4, window_bounds = array<i64: 1, 64, 128>}]} {
    %c0 = arith.constant 0 : index
    %c0_0 = arith.constant 0 : index
    %c0_1 = arith.constant 0 : index
    %0 = vector.load %arg2[%c0, %c0_0, %c0_1] : memref<1x64x32xf32, #tpu.memory_space<vmem>>, vector<1x64x32xf32>
    %1 = vector.shape_cast %0 : vector<1x64x32xf32> to vector<64x32xf32>
    %c0_2 = arith.constant 0 : index
    %c0_3 = arith.constant 0 : index
    %c0_4 = arith.constant 0 : index
    %2 = vector.load %arg3[%c0_2, %c0_3, %c0_4] : memref<1x32x128xbf16, #tpu.memory_space<vmem>>, vector<1x32x128xbf16>
    %3 = vector.shape_cast %2 : vector<1x32x128xbf16> to vector<32x128xbf16>
    %4 = arith.extf %3 : vector<32x128xbf16> to vector<32x128xf32>
    %cst = arith.constant dense<0.000000e+00> : vector<64x128xf32>
    %5 = tpu.matmul %1, %4, %cst {dimension_numbers = #tpu.dot_dimension_numbers<[1], [0], [0], [1], [0, 0, 1, 1], [], []>} : vector<64x32xf32>, vector<32x128xf32>, vector<64x128xf32> -> vector<64x128xf32>
    %6 = arith.negf %5 : vector<64x128xf32>
    %7 = math.exp %6 : vector<64x128xf32>
    %cst_5 = arith.constant 1.000000e+00 : f32
    %8 = vector.broadcast %cst_5 : f32 to vector<64x128xf32>
    %9 = arith.addf %8, %7 : vector<64x128xf32>
    %10 = arith.divf %8, %9 : vector<64x128xf32>
    %11 = arith.mulf %10, %10 : vector<64x128xf32>
    %cst_6 = arith.constant -7.500000e-01 : f32
    %12 = vector.broadcast %cst_6 : f32 to vector<64x128xf32>
    %13 = arith.mulf %12, %11 : vector<64x128xf32>
    %cst_7 = arith.constant 1.000000e+00 : f32
    %14 = vector.broadcast %cst_7 : f32 to vector<64x128xf32>
    %15 = arith.subf %14, %10 : vector<64x128xf32>
    %cst_8 = arith.constant 9.99999997E-7 : f32
    %16 = vector.broadcast %cst_8 : f32 to vector<64x128xf32>
    %17 = arith.addf %15, %16 : vector<64x128xf32>
    %18 = math.log %17 : vector<64x128xf32>
    %19 = arith.mulf %13, %18 : vector<64x128xf32>
    %cst_9 = arith.constant 1.000000e+00 : f32
    %20 = vector.broadcast %cst_9 : f32 to vector<64x128xf32>
    %21 = arith.subf %20, %10 : vector<64x128xf32>
    %22 = arith.mulf %21, %21 : vector<64x128xf32>
    %cst_10 = arith.constant -2.500000e-01 : f32
    %23 = vector.broadcast %cst_10 : f32 to vector<64x128xf32>
    %24 = arith.mulf %23, %22 : vector<64x128xf32>
    %cst_11 = arith.constant 9.99999997E-7 : f32
    %25 = vector.broadcast %cst_11 : f32 to vector<64x128xf32>
    %26 = arith.addf %10, %25 : vector<64x128xf32>
    %27 = math.log %26 : vector<64x128xf32>
    %28 = arith.mulf %24, %27 : vector<64x128xf32>
    %29 = arith.subf %28, %19 : vector<64x128xf32>
    %c0_12 = arith.constant 0 : index
    %c0_13 = arith.constant 0 : index
    %c0_14 = arith.constant 0 : index
    %30 = vector.load %arg4[%c0_12, %c0_13, %c0_14] : memref<1x64x4xf32, #tpu.memory_space<vmem>>, vector<1x64x4xf32>
    %31 = vector.shape_cast %30 : vector<1x64x4xf32> to vector<64x4xf32>
    %c0_15 = arith.constant 0 : index
    %c0_16 = arith.constant 0 : index
    %c0_17 = arith.constant 0 : index
    %32 = vector.load %arg5[%c0_15, %c0_16, %c0_17] : memref<1x4x128xf32, #tpu.memory_space<vmem>>, vector<1x4x128xf32>
    %33 = vector.shape_cast %32 : vector<1x4x128xf32> to vector<4x128xf32>
    %34 = vector.extract_strided_slice %31 {offsets = [0, 0], sizes = [64, 1], strides = [1, 1]} : vector<64x4xf32> to vector<64x1xf32>
    %35 = vector.extract_strided_slice %31 {offsets = [0, 1], sizes = [64, 1], strides = [1, 1]} : vector<64x4xf32> to vector<64x1xf32>
    %36 = vector.extract_strided_slice %31 {offsets = [0, 2], sizes = [64, 1], strides = [1, 1]} : vector<64x4xf32> to vector<64x1xf32>
    %37 = vector.extract_strided_slice %31 {offsets = [0, 3], sizes = [64, 1], strides = [1, 1]} : vector<64x4xf32> to vector<64x1xf32>
    %38 = vector.extract_strided_slice %33 {offsets = [0, 0], sizes = [1, 128], strides = [1, 1]} : vector<4x128xf32> to vector<1x128xf32>
    %39 = vector.extract_strided_slice %33 {offsets = [1, 0], sizes = [1, 128], strides = [1, 1]} : vector<4x128xf32> to vector<1x128xf32>
    %40 = vector.extract_strided_slice %33 {offsets = [2, 0], sizes = [1, 128], strides = [1, 1]} : vector<4x128xf32> to vector<1x128xf32>
    %41 = vector.extract_strided_slice %33 {offsets = [3, 0], sizes = [1, 128], strides = [1, 1]} : vector<4x128xf32> to vector<1x128xf32>
    %42 = vector.broadcast %34 : vector<64x1xf32> to vector<64x128xf32>
    %43 = vector.broadcast %38 : vector<1x128xf32> to vector<64x128xf32>
    %44 = arith.subf %42, %43 : vector<64x128xf32>
    %45 = math.absf %44 : vector<64x128xf32>
    %46 = vector.broadcast %35 : vector<64x1xf32> to vector<64x128xf32>
    %47 = vector.broadcast %39 : vector<1x128xf32> to vector<64x128xf32>
    %48 = arith.subf %46, %47 : vector<64x128xf32>
    %49 = math.absf %48 : vector<64x128xf32>
    %50 = arith.addf %45, %49 : vector<64x128xf32>
    %51 = vector.broadcast %36 : vector<64x1xf32> to vector<64x128xf32>
    %52 = vector.broadcast %40 : vector<1x128xf32> to vector<64x128xf32>
    %53 = arith.subf %51, %52 : vector<64x128xf32>
    %54 = math.absf %53 : vector<64x128xf32>
    %55 = arith.addf %50, %54 : vector<64x128xf32>
    %56 = vector.broadcast %37 : vector<64x1xf32> to vector<64x128xf32>
    %57 = vector.broadcast %41 : vector<1x128xf32> to vector<64x128xf32>
    %58 = arith.subf %56, %57 : vector<64x128xf32>
    %59 = math.absf %58 : vector<64x128xf32>
    %60 = arith.addf %55, %59 : vector<64x128xf32>
    %cst_18 = arith.constant 5.000000e-01 : f32
    %61 = vector.broadcast %cst_18 : f32 to vector<64x1xf32>
    %62 = arith.mulf %61, %36 : vector<64x1xf32>
    %63 = arith.subf %34, %62 : vector<64x1xf32>
    %cst_19 = arith.constant 5.000000e-01 : f32
    %64 = vector.broadcast %cst_19 : f32 to vector<64x1xf32>
    %65 = arith.mulf %64, %36 : vector<64x1xf32>
    %66 = arith.addf %34, %65 : vector<64x1xf32>
    %cst_20 = arith.constant 5.000000e-01 : f32
    %67 = vector.broadcast %cst_20 : f32 to vector<64x1xf32>
    %68 = arith.mulf %67, %37 : vector<64x1xf32>
    %69 = arith.subf %35, %68 : vector<64x1xf32>
    %cst_21 = arith.constant 5.000000e-01 : f32
    %70 = vector.broadcast %cst_21 : f32 to vector<64x1xf32>
    %71 = arith.mulf %70, %37 : vector<64x1xf32>
    %72 = arith.addf %35, %71 : vector<64x1xf32>
    %cst_22 = arith.constant 5.000000e-01 : f32
    %73 = vector.broadcast %cst_22 : f32 to vector<1x128xf32>
    %74 = arith.mulf %73, %40 : vector<1x128xf32>
    %75 = arith.subf %38, %74 : vector<1x128xf32>
    %cst_23 = arith.constant 5.000000e-01 : f32
    %76 = vector.broadcast %cst_23 : f32 to vector<1x128xf32>
    %77 = arith.mulf %76, %40 : vector<1x128xf32>
    %78 = arith.addf %38, %77 : vector<1x128xf32>
    %cst_24 = arith.constant 5.000000e-01 : f32
    %79 = vector.broadcast %cst_24 : f32 to vector<1x128xf32>
    %80 = arith.mulf %79, %41 : vector<1x128xf32>
    %81 = arith.subf %39, %80 : vector<1x128xf32>
    %cst_25 = arith.constant 5.000000e-01 : f32
    %82 = vector.broadcast %cst_25 : f32 to vector<1x128xf32>
    %83 = arith.mulf %82, %41 : vector<1x128xf32>
    %84 = arith.addf %39, %83 : vector<1x128xf32>
    %85 = arith.subf %66, %63 : vector<64x1xf32>
    %86 = arith.subf %72, %69 : vector<64x1xf32>
    %87 = arith.mulf %85, %86 : vector<64x1xf32>
    %88 = arith.subf %78, %75 : vector<1x128xf32>
    %89 = arith.subf %84, %81 : vector<1x128xf32>
    %90 = arith.mulf %88, %89 : vector<1x128xf32>
    %91 = vector.broadcast %66 : vector<64x1xf32> to vector<64x128xf32>
    %92 = vector.broadcast %78 : vector<1x128xf32> to vector<64x128xf32>
    %93 = arith.minimumf %91, %92 : vector<64x128xf32>
    %94 = vector.broadcast %63 : vector<64x1xf32> to vector<64x128xf32>
    %95 = vector.broadcast %75 : vector<1x128xf32> to vector<64x128xf32>
    %96 = arith.maximumf %94, %95 : vector<64x128xf32>
    %97 = arith.subf %93, %96 : vector<64x128xf32>
    %cst_26 = arith.constant 0.000000e+00 : f32
    %98 = vector.broadcast %cst_26 : f32 to vector<64x128xf32>
    %99 = arith.maximumf %97, %98 : vector<64x128xf32>
    %100 = vector.broadcast %72 : vector<64x1xf32> to vector<64x128xf32>
    %101 = vector.broadcast %84 : vector<1x128xf32> to vector<64x128xf32>
    %102 = arith.minimumf %100, %101 : vector<64x128xf32>
    %103 = vector.broadcast %69 : vector<64x1xf32> to vector<64x128xf32>
    %104 = vector.broadcast %81 : vector<1x128xf32> to vector<64x128xf32>
    %105 = arith.maximumf %103, %104 : vector<64x128xf32>
    %106 = arith.subf %102, %105 : vector<64x128xf32>
    %cst_27 = arith.constant 0.000000e+00 : f32
    %107 = vector.broadcast %cst_27 : f32 to vector<64x128xf32>
    %108 = arith.maximumf %106, %107 : vector<64x128xf32>
    %109 = arith.mulf %99, %108 : vector<64x128xf32>
    %110 = vector.broadcast %87 : vector<64x1xf32> to vector<64x128xf32>
    %111 = vector.broadcast %90 : vector<1x128xf32> to vector<64x128xf32>
    %112 = arith.addf %110, %111 : vector<64x128xf32>
    %113 = arith.subf %112, %109 : vector<64x128xf32>
    %114 = tpu.reciprocal %113 {approx = true} : vector<64x128xf32> -> vector<64x128xf32>
    %115 = arith.mulf %109, %114 : vector<64x128xf32>
    %116 = vector.broadcast %66 : vector<64x1xf32> to vector<64x128xf32>
    %117 = vector.broadcast %78 : vector<1x128xf32> to vector<64x128xf32>
    %118 = arith.maximumf %116, %117 : vector<64x128xf32>
    %119 = vector.broadcast %63 : vector<64x1xf32> to vector<64x128xf32>
    %120 = vector.broadcast %75 : vector<1x128xf32> to vector<64x128xf32>
    %121 = arith.minimumf %119, %120 : vector<64x128xf32>
    %122 = arith.subf %118, %121 : vector<64x128xf32>
    %cst_28 = arith.constant 0.000000e+00 : f32
    %123 = vector.broadcast %cst_28 : f32 to vector<64x128xf32>
    %124 = arith.maximumf %122, %123 : vector<64x128xf32>
    %125 = vector.broadcast %72 : vector<64x1xf32> to vector<64x128xf32>
    %126 = vector.broadcast %84 : vector<1x128xf32> to vector<64x128xf32>
    %127 = arith.maximumf %125, %126 : vector<64x128xf32>
    %128 = vector.broadcast %69 : vector<64x1xf32> to vector<64x128xf32>
    %129 = vector.broadcast %81 : vector<1x128xf32> to vector<64x128xf32>
    %130 = arith.minimumf %128, %129 : vector<64x128xf32>
    %131 = arith.subf %127, %130 : vector<64x128xf32>
    %cst_29 = arith.constant 0.000000e+00 : f32
    %132 = vector.broadcast %cst_29 : f32 to vector<64x128xf32>
    %133 = arith.maximumf %131, %132 : vector<64x128xf32>
    %134 = arith.mulf %124, %133 : vector<64x128xf32>
    %135 = arith.subf %134, %113 : vector<64x128xf32>
    %136 = tpu.reciprocal %134 {approx = true} : vector<64x128xf32> -> vector<64x128xf32>
    %137 = arith.mulf %135, %136 : vector<64x128xf32>
    %138 = arith.subf %115, %137 : vector<64x128xf32>
    %cst_30 = arith.constant 0.000000e+00 : f32
    %139 = vector.broadcast %cst_30 : f32 to vector<64x128xf32>
    %140 = arith.subf %139, %138 : vector<64x128xf32>
    %cst_31 = arith.constant 1.000000e+00 : f32
    %141 = vector.broadcast %cst_31 : f32 to vector<64x128xf32>
    %142 = arith.mulf %141, %60 : vector<64x128xf32>
    %cst_32 = arith.constant 1.000000e+00 : f32
    %143 = vector.broadcast %cst_32 : f32 to vector<64x128xf32>
    %144 = arith.mulf %143, %29 : vector<64x128xf32>
    %145 = arith.addf %142, %144 : vector<64x128xf32>
    %cst_33 = arith.constant 1.000000e+00 : f32
    %146 = vector.broadcast %cst_33 : f32 to vector<64x128xf32>
    %147 = arith.mulf %146, %140 : vector<64x128xf32>
    %148 = arith.addf %145, %147 : vector<64x128xf32>
    %c0_34 = arith.constant 0 : index
    %c0_35 = arith.constant 0 : index
    %c0_36 = arith.constant 0 : index
    %149 = vector.load %arg6[%c0_34, %c0_35, %c0_36] : memref<1x64x128xf32, #tpu.memory_space<vmem>>, vector<1x64x128xf32>
    %150 = vector.shape_cast %149 : vector<1x64x128xf32> to vector<64x128xf32>
    %151 = vector.shape_cast %148 : vector<64x128xf32> to vector<1x64x128xf32>
    tpu.vector_store %arg6[%c0_34, %c0_35, %c0_36], %151 {strides = array<i32>} : memref<1x64x128xf32, #tpu.memory_space<vmem>>, vector<1x64x128xf32>,
    return
  }
  func.func @transform_0(%arg0: i32, %arg1: i32) -> (i32, i32, i32) {
    %c0_i32 = arith.constant 0 : i32
    %c0_i32_0 = arith.constant 0 : i32
    return %arg0, %arg1, %c0_i32 : i32, i32, i32
  }
  func.func @transform_1(%arg0: i32, %arg1: i32) -> (i32, i32, i32) {
    %c0_i32 = arith.constant 0 : i32
    %c0_i32_0 = arith.constant 0 : i32
    %c0_i32_1 = arith.constant 0 : i32
    return %arg0, %c0_i32, %c0_i32_0 : i32, i32, i32
  }
  func.func @transform_2(%arg0: i32, %arg1: i32) -> (i32, i32, i32) {
    %c0_i32 = arith.constant 0 : i32
    %c0_i32_0 = arith.constant 0 : i32
    return %arg0, %arg1, %c0_i32 : i32, i32, i32
  }
  func.func @transform_3(%arg0: i32, %arg1: i32) -> (i32, i32, i32) {
    %c0_i32 = arith.constant 0 : i32
    %c0_i32_0 = arith.constant 0 : i32
    %c0_i32_1 = arith.constant 0 : i32
    return %arg0, %c0_i32, %c0_i32_0 : i32, i32, i32
  }
  func.func @transform_4(%arg0: i32, %arg1: i32) -> (i32, i32, i32) {
    %c0_i32 = arith.constant 0 : i32
    %c0_i32_0 = arith.constant 0 : i32
    return %arg0, %arg1, %c0_i32 : i32, i32, i32
  }
}

</mosaic_0001>

<bundles_post_ra>
// kernel: tpu_custom_call.1
= control target key start
LH: loop header
LB: loop body
LE: loop exit
PB: predicated region body
PF: predicated region fallthrough
CT: control target
= control target key end

     0   :  { %9 = vsyncpa [#allocation3], 0  ;;  %s3016_s0 = inlined_call_operand.vmem [shape: f32[2,64,32], index: 0, kind: input, shape index: {}]   ;;  %s3017_s1 = inlined_call_operand.vmem [shape: bf16[2,32,128], index: 1, kind: input, shape index: {}]   ;;  %s3018_s2 = inlined_call_operand.vmem [shape: f32[2,64,4], index: 2, kind: input, shape index: {}]   ;;  %s3019_s3 = inlined_call_operand.vmem [shape: f32[2,4,128], index: 3, kind: input, shape index: {}]   ;;  %s3020_s4 = inlined_call_operand.hbm [shape: f32[2,64,128], index: 4, kind: output, shape index: {}]  }
   0x1   :  { %11 = vsyncpa [#allocation3 + $0x1], 0  ;;  %s1915_s15 = smov 0   ;;  %s1917_s16 = smov 0  }
   0x2   :  { %s1919_s17 = smov 0   ;;  %s1921_s18 = smov 0  }
   0x3   :  { %s1923_s19 = smov 0   ;;  %s1925_s20 = smov 0  }
   0x4 LB: > { %s1566_s21 = sadd.s32 4294967295, %s1880_s20   ;;  %s1567_s22 = sadd.s32 4294967294, %s1880_s20   ;;  %s1880_s20 = sphi %s1925_s20, %s17_s20   ;;  %s1876_s19 = sphi %s1923_s19, %s3135_s19   ;;  %s1872_s18 = sphi %s1921_s18, %s3134_s18   ;;  %s1868_s17 = sphi %s1919_s17, %s3133_s17   ;;  %s1864_s16 = sphi %s1917_s16, %s3132_s16   ;;  %s1860_s15 = sphi %s1915_s15, %s3131_s15  }
   0x5   : > { %s29_s23 = sadd.s32 1, %s1876_s19  ;;  %s146_s24 = sadd.s32 1, %s1868_s17 }
   0x6   : > { %p31_p0 = scmp.ge.s32.totalorder %s29_s23, 2  ;;  %p156_p1 = scmp.ne.s32.totalorder %s1868_s17, %s1864_s16 }
   0x7   : > { %p157_p2 = scmp.eq.s32.totalorder %s1566_s21, 1  ;;  %p162_p3 = scmp.ne.s32.totalorder %s1864_s16, %s1860_s15 }
   0x8   : > { %s3137_s23 = smov (%p31_p0, %s29_s23), 0  ;;  %p163_p5 = scmp.eq.s32.totalorder %s1567_s22, 1 }
   0x9   : > { %p1955_p4 = por %p157_p2, %p156_p1  ;;  %s141_s26 = ssub.s32 %s1876_s19, %s3137_s23 }
   0xa   : > { %p1570_p6 = scmp.ge.s32.totalorder %s1880_s20, 1  ;;  %p144_p7 = scmp.eq.s32.totalorder %s141_s26, 0 }
   0xb   : > { %p1962_p8 = por %p163_p5, %p162_p3  ;;  %p222_p9 = scmp.lt.s32.totalorder %s1880_s20, 3 }
   0xc   : > { %s1968_s28 = scalar_select %p144_p7, %s1868_s17, %s146_s24  }
   0xd   : > { %p223_p10 = pnand %p1570_p6, %p222_p9 }
   0xf   : > { %226 = sbr.rel (%p223_p10) target bundleno = 512 (0x200), region = 36 }
  0x14   : > { %p271_p11 = scmp.lt.s32.totalorder %s1872_s18, 1  ;;  %v1882_v0 = vmov 2   ;;  %v1883_v1 = vmov 0   ;;  %vm316_vm0 = vcmask 261120   ;;  %v1884_v20 = vmov 1   ;;  %s1886_s21 = smov 126  }
  0x15   : > { %1693 = vset.pattern.permute.xlu0 %v1882_v0  ;;  %1689 = vset.pattern.permute.xlu2 %v1883_v1  ;;  %v1885_v22 = vmov 3   ;;  %s267_s5 = sand.u32 1, %s1864_s16   ;;  %s1822_s26 = scalar_lea.hbm %s3020_s4, 128 }
  0x16   : > { %1688 = vset.pattern.permute.xlu1 %v1883_v1  ;;  %s1975_s29 = scalar_select %p271_p11, %s1872_s18, 1 }
  0x17   : > { %s1571_s6 = sshll.u32 %s267_s5, 6  ;;  %s1428_s13 = scalar_lea.sflag [#allocation3], %s267_s5 }
  0x18   : > { %s1600_s30 = sshll.u32 %s1975_s29, 6  ;;  %s1601_s8 = sshll.u32 %s1975_s29, 4 }
  0x19   : > { %s1981_s7 = scalar_lea.vmem %s3018_s2, %s1600_s30  ;;  %s284_s11 = scalar_lea.vmem %s3017_s1, %s1601_s8 }
  0x1a   : > { %v1984_v2 = vld [vmem:[%s1981_s7 + $0x20] sm:$0xff]  ;;  %v1987_v3 = vld [vmem:[%s1981_s7 + $0x10] sm:$0xff]  ;;  %v1993_v4 = vld [vmem:[%s1981_s7 + $0x8] sm:$0xff]  ;;  %s2002_s14 = scalar_lea.vmem %s3016_s0, %s1600_s30  ;;  %s1578_s22 = sshll.u32 %s1975_s29, 2 }
  0x1b   : > { %677 = vperm.xlu2 %1689, %v1984_v2   ;;  %667 = vperm.xlu1 %1688, %v1987_v3   ;;  %v1612_v5 = vld [vmem:[%s284_s11 + $0x8] sm:$0xff]   ;;  %v1605_v6 = vld [vmem:[%s284_s11] sm:$0xff]   ;;  %v2008_v12 = vld [vmem:[%s1981_s7 + $0x18] sm:$0xff]  ;;  %v884_v24 = vmul.f32 0.5, %v1993_v4  ;;  %v887_v25 = vmul.f32 0.5, %v1984_v2  ;;  %s298_s30 = scalar_lea.vmem %s3019_s3, %s1578_s22  ;;  %v885_v32 = vmul.f32 0.5, %v1987_v3 }
  0x1c   : > { %774 = vperm.xlu0 %1693, %v1993_v4   ;;  %v1611_v7 = vunpack.c.h.bf16 %v1612_v5  ;;  %v1610_v8 = vunpack.c.l.bf16 %v1612_v5  ;;  %v1607_v9 = vunpack.c.h.bf16 %v1605_v6  ;;  %v1606_v10 = vunpack.c.l.bf16 %v1605_v6  ;;  %v2005_v11 = vld [vmem:[%s1981_s7 + $0x28] sm:$0xff]  ;;  %v2011_v13 = vld [vmem:[%s1981_s7 + $0x30] sm:$0xff]  ;;  %v304_v15 = vld [vmem:[%s2002_s14 + $0x20] sm:$0xff]  ;;  %s1887_s29 = smov 127   ;;  %s1603_s8 = sshll.u32 %s1872_s18, 6 }
  0x1d   : > { %v302_v14 = vld [vmem:[%s2002_s14 + $0x10] sm:$0xff]  ;;  %v2022_v17 = vld [vmem:[%s1981_s7 + $0x38] sm:$0xff]  ;;  %v2025_v18 = vld [vmem:[%s1981_s7] sm:$0xff]  ;;  %v886_v33 = vmul.f32 0.5, %v2008_v12  ;;  %v888_v36 = vmul.f32 0.5, %v2005_v11  ;;  %v889_v37 = vmul.f32 0.5, %v2011_v13  ;;  %s1441_s11 = scalar_lea.hbm %s3020_s4, %s1603_s8 }
  0x1e   : > { %1613 = vmatpush.msra.mxu1 %v1611_v7  ;;  %1614 = vmatpush.msra.mxu2 %v1611_v7  ;;  %v306_v16 = vld [vmem:[%s2002_s14 + $0x30] sm:$0xff]  ;;  %v303_v19 = vld [vmem:[%s2002_s14 + $0x18] sm:$0xff]  ;;  %v305_v21 = vld [vmem:[%s2002_s14 + $0x28] sm:$0xff]  ;;  %v890_v26 = vmul.f32 0.5, %v2022_v17  ;;  %v883_v28 = vmul.f32 0.5, %v2025_v18  ;;  %s2790_s7 = scalar_lea.vmem [#allocation2], %s1571_s6 }
  0x1f   : > { %1615 = vmatpush.msra.mxu3 %v1611_v7  ;;  %353 = vmatpush.msra.mxu0 %v1611_v7  ;;  %v307_v23 = vld [vmem:[%s2002_s14 + $0x38] sm:$0xff]  ;;  %v2071_v27 = vld [vmem:[%s298_s30] sm:$0xf]  ;;  %s1442_s18 = sshll.u32 %s2790_s7, 4  ;;  %s1444_s12 = sshll.u32 %s1441_s11, 4  ;;  %s1443_s18 = int_to_ptr.vmem [resolvable:$true] %s1442_s18  ;;  %s1445_s12 = int_to_ptr.hbm [resolvable:$true] %s1444_s12 }
  0x20   : > { %1616 = vmatpush.msra.mxu1 %v1610_v8  ;;  %1617 = vmatpush.msra.mxu2 %v1610_v8  ;;  %v2075_v29 = vperm.slane %v2071_v27, 0  ;;  %v2090_v38 = vperm.slane %v2071_v27, 1  ;;  %v2099_v42 = vperm.slane %v2071_v27, 2  ;;  %v2115_v62 = vperm.slane %v2071_v27, 3 }
  0x21   : > { %1618 = vmatpush.msra.mxu3 %v1610_v8  ;;  %354 = vmatpush.msra.mxu0 %v1610_v8 }
  0x22   : > { %1619 = vmatpush.msra.mxu1 %v1607_v9  ;;  %1620 = vmatpush.msra.mxu2 %v1607_v9 }
  0x23   : > { %682 = vperm.xlu2 %1689, %v2005_v11   ;;  %672 = vperm.xlu1 %1688, %v2008_v12  }
  0x24   : > { %1622 = vmatpush.msra.mxu1 %v1606_v10  ;;  %1623 = vmatpush.msra.mxu2 %v1606_v10 }
  0x25   : > { %794 = vperm.xlu0 %1693, %v2011_v13   ;;  %1581 = vmatmul.msk.f32.vlgmr.msra.gmra.mxu1 %vm316_vm0, %v302_v14 }
  0x26   : > { %1583 = vmatmul.msk.f32.vlgmr.msra.gmra.mxu2 %vm316_vm0, %v304_v15  ;;  %1621 = vmatpush.msra.mxu3 %v1607_v9 }
  0x27   : > { %355 = vmatpush.msra.mxu0 %v1607_v9 }
  0x28   : > { %1624 = vmatpush.msra.mxu3 %v1606_v10 }
  0x29   : > { %1585 = vmatmul.msk.f32.vlgmr.msra.gmra.mxu3 %vm316_vm0, %v306_v16  ;;  %356 = vmatpush.msra.mxu0 %v1606_v10 }
  0x2b   : > { %1690 = vset.pattern.permute.xlu2 %v1884_v20  ;;  %692 = vperm.xlu1 %1688, %v2022_v17  }
  0x2c   : > { %713 = vperm.xlu2 %1690, %v2025_v18  }
  0x2d   : > { %1696 = vset.pattern.permute.xlu0 %v1885_v22  ;;  %1582 = vmatmul.msk.f32.gmra.mxu1 %vm316_vm0, %v303_v19 }
  0x2e   : > { %831 = vperm.xlu0 %1696, %v1993_v4   ;;  %1584 = vmatmul.msk.f32.gmra.mxu2 %vm316_vm0, %v305_v21 }
  0x31   : > { %1586 = vmatmul.msk.f32.gmra.mxu3 %vm316_vm0, %v307_v23 }
  0x33   : > { %1691 = vset.pattern.permute.xlu1 %v1884_v20 }
  0x34   : > { %721 = vperm.xlu1 %1691, %v1987_v3   ;;  %725 = vperm.xlu2 %1690, %v2008_v12  }
  0x36   : > { %851 = vperm.xlu0 %1696, %v2011_v13  }
  0x3c   : > { %729 = vperm.xlu1 %1691, %v1984_v2   ;;  %733 = vperm.xlu2 %1690, %v2005_v11  }
  0x3e   : > { %1698 = vset.pattern.permute.xlu0 %v1884_v20 }
  0x3f   : > { %717 = vperm.xlu0 %1698, %v1993_v4  }
  0x44   : > { %741 = vperm.xlu1 %1691, %v2022_v17   ;;  %1692 = vset.pattern.permute.xlu2 %v1882_v0 }
  0x45   : > { %770 = vperm.xlu2 %1692, %v2025_v18  }
  0x47   : > { %737 = vperm.xlu0 %1698, %v2011_v13  }
  0x4c   : > { %1694 = vset.pattern.permute.xlu1 %v1882_v0 }
  0x4d   : > { %778 = vperm.xlu1 %1694, %v1987_v3   ;;  %782 = vperm.xlu2 %1692, %v2008_v12  }
  0x4f   : > { %901 = vrot.lane.b32.xlu0 %v884_v24, %s1886_s21 }
  0x55   : > { %786 = vperm.xlu1 %1694, %v1984_v2   ;;  %790 = vperm.xlu2 %1692, %v2005_v11  }
  0x57   : > { %907 = vrot.lane.b32.xlu0 %v887_v25, %s1886_s21 }
  0x5d   : > { %798 = vperm.xlu1 %1694, %v2022_v17   ;;  %1695 = vset.pattern.permute.xlu2 %v1885_v22 }
  0x5e   : > { %827 = vperm.xlu2 %1695, %v2025_v18  }
  0x5f   : > { %913 = vrot.lane.b32.xlu0 %v890_v26, %s1886_s21 }
  0x65   : > { %1697 = vset.pattern.permute.xlu1 %v1885_v22 }
  0x66   : > { %835 = vperm.xlu1 %1697, %v1987_v3   ;;  %839 = vperm.xlu2 %1695, %v2008_v12  }
  0x6e   : > { %843 = vperm.xlu1 %1697, %v1984_v2   ;;  %847 = vperm.xlu2 %1695, %v2005_v11  }
  0x75   : > { %v678_v30 = vpop.permute.xlu2 %677 }
  0x76   : > { %v700_v31 = vsub.f32 %v678_v30, %v2075_v29  ;;  %855 = vperm.xlu1 %1697, %v2022_v17   ;;  %899 = vrot.lane.b32.xlu2 %v883_v28, %s1886_s21 }
  0x77   : > { %1700 = vset.pattern.permute.xlu2 %v1883_v1 }
  0x78   : > { %v708_v30 = vand.u32 2147483647, %v700_v31 }
  0x7d   : > { %v683_v34 = vpop.permute.xlu2 %682 }
  0x7e   : > { %v701_v35 = vsub.f32 %v683_v34, %v2075_v29  ;;  %903 = vrot.lane.b32.xlu1 %v885_v32, %s1886_s21  ;;  %905 = vrot.lane.b32.xlu2 %v886_v33, %s1886_s21 }
  0x7f   : > { %1699 = vset.pattern.permute.xlu1 %v1883_v1 }
  0x80   : > { %v709_v56 = vand.u32 2147483647, %v701_v35 }
  0x86   : > { %909 = vrot.lane.b32.xlu1 %v888_v36, %s1886_s21  ;;  %v2093_v39 = vpop.permute.xlu2 %713  ;;  %911 = vrot.lane.b32.xlu2 %v889_v37, %s1886_s21 }
  0x87   : > { %v745_v40 = vsub.f32 %v2093_v39, %v2090_v38 }
  0x8d   : > { %v668_v41 = vpop.permute.xlu1 %667 }
  0x8e   : > { %v698_v43 = vsub.f32 %v668_v41, %v2075_v29  ;;  %v2102_v44 = vpop.permute.xlu0 %774  ;;  %v726_v45 = vpop.permute.xlu2 %725 }
  0x8f   : > { %v803_v46 = vsub.f32 %v2102_v44, %v2099_v42  ;;  %v748_v47 = vsub.f32 %v726_v45, %v2090_v38 }
  0x90   : > { %v706_v15 = vand.u32 2147483647, %v698_v43 }
  0x91   : > { %v756_v49 = vand.u32 2147483647, %v748_v47 }
  0x95   : > { %v673_v48 = vpop.permute.xlu1 %672 }
  0x96   : > { %v699_v50 = vsub.f32 %v673_v48, %v2075_v29  ;;  %v734_v51 = vpop.permute.xlu2 %733 }
  0x97   : > { %v750_v52 = vsub.f32 %v734_v51, %v2090_v38  ;;  %v2109_v53 = vpop.permute.xlu0 %794 }
  0x98   : > { %v707_v54 = vand.u32 2147483647, %v699_v50  ;;  %v808_v55 = vsub.f32 %v2109_v53, %v2099_v42 }
  0x99   : > { %v758_v57 = vand.u32 2147483647, %v750_v52 }
  0x9a   : > { %v764_v58 = vadd.f32 %v756_v49, %v707_v54 }
  0x9b   : > { %v766_v59 = vadd.f32 %v758_v57, %v709_v56 }
  0x9d   : > { %v693_v60 = vpop.permute.xlu1 %692 }
  0x9e   : > { %v703_v61 = vsub.f32 %v693_v60, %v2075_v29 }
  0x9f   : > { %v2117_v63 = vpop.permute.xlu2 %770 }
  0xa0   : > { %v2119_v0 = vpop.permute.xlu0 %831  ;;  %v802_v5 = vsub.f32 %v2117_v63, %v2099_v42  ;;  %v711_v47 = vand.u32 2147483647, %v703_v61 }
  0xa1   : > { %v860_v6 = vsub.f32 %v2119_v0, %v2115_v62 }
  0xa2   : > { %v2390_v39 = vand.u32 2147483647, %v802_v5 }
  0xa6   : > { %v722_v7 = vpop.permute.xlu1 %721 }
  0xa7   : > { %v747_v8 = vsub.f32 %v722_v7, %v2090_v38  ;;  %v783_v9 = vpop.permute.xlu2 %782 }
  0xa8   : > { %v2126_v10 = vpop.permute.xlu0 %851  ;;  %v805_v14 = vsub.f32 %v783_v9, %v2099_v42 }
  0xa9   : > { %v755_v16 = vand.u32 2147483647, %v747_v8  ;;  %v865_v19 = vsub.f32 %v2126_v10, %v2115_v62 }
  0xaa   : > { %v813_v21 = vand.u32 2147483647, %v805_v14 }
  0xab   : > { %v763_v22 = vadd.f32 %v755_v16, %v706_v15 }
  0xac   : > { %v821_v23 = vadd.f32 %v813_v21, %v764_v58 }
  0xae   : > { %v730_v24 = vpop.permute.xlu1 %729 }
  0xaf   : > { %v749_v25 = vsub.f32 %v730_v24, %v2090_v38  ;;  %v791_v26 = vpop.permute.xlu2 %790 }
  0xb0   : > { %v807_v28 = vsub.f32 %v791_v26, %v2099_v42 }
  0xb1   : > { %v757_v32 = vand.u32 2147483647, %v749_v25  ;;  %v2133_v33 = vpop.permute.xlu0 %717 }
  0xb2   : > { %v746_v34 = vsub.f32 %v2133_v33, %v2090_v38  ;;  %v815_v35 = vand.u32 2147483647, %v807_v28 }
  0xb3   : > { %v765_v36 = vadd.f32 %v757_v32, %v708_v30 }
  0xb4   : > { %v823_v37 = vadd.f32 %v815_v35, %v766_v59  ;;  %v2419_v10 = vand.u32 2147483647, %v746_v34 }
  0xb6   : > { %v742_v41 = vpop.permute.xlu1 %741 }
  0xb7   : > { %v752_v43 = vsub.f32 %v742_v41, %v2090_v38 }
  0xb8   : > { %v2138_v45 = vpop.permute.xlu2 %827 }
  0xb9   : > { %v760_v48 = vand.u32 2147483647, %v752_v43  ;;  %v2140_v49 = vpop.permute.xlu0 %737 }
  0xbb   : > { %v768_v51 = vadd.f32 %v760_v48, %v711_v47 }
  0xbf   : > { %v779_v52 = vpop.permute.xlu1 %778 }
  0xc0   : > { %v804_v54 = vsub.f32 %v779_v52, %v2099_v42  ;;  %v840_v56 = vpop.permute.xlu2 %839 }
  0xc1   : > { %v902_v57 = vpop.permute.xlu0 %901  ;;  %v862_v61 = vsub.f32 %v840_v56, %v2115_v62 }
  0xc2   : > { %v812_v58 = vand.u32 2147483647, %v804_v54  ;;  %v2148_v59 = vsub.f32 %v1993_v4, %v902_v57  ;;  %v2151_v60 = vadd.f32 %v902_v57, %v1993_v4 }
  0xc3   : > { %v870_v9 = vand.u32 2147483647, %v862_v61 }
  0xc4   : > { %v820_v7 = vadd.f32 %v812_v58, %v763_v22  ;;  %v2156_v8 = vsub.f32 %v2151_v60, %v2148_v59 }
  0xc5   : > { %v2160_v15 = vadd.f32 %v870_v9, %v821_v23 }
  0xc6   : > { %963 = vrot.lane.b32.xlu2 %v2156_v8, %s1887_s29 }
  0xc7   : > { %v787_v14 = vpop.permute.xlu1 %786  ;;  %3037 = vst [vmem:[#allocation5_spill] sm:$0xff] %v2160_v15 }
  0xc8   : > { %v848_v16 = vpop.permute.xlu2 %847  ;;  %v806_v24 = vsub.f32 %v787_v14, %v2099_v42 }
  0xc9   : > { %v908_v21 = vpop.permute.xlu0 %907  ;;  %v864_v28 = vsub.f32 %v848_v16, %v2115_v62 }
  0xca   : > { %v2164_v25 = vsub.f32 %v1984_v2, %v908_v21  ;;  %v2167_v22 = vadd.f32 %v908_v21, %v1984_v2  ;;  %v814_v26 = vand.u32 2147483647, %v806_v24 }
  0xcb   : > { %v872_v23 = vand.u32 2147483647, %v864_v28 }
  0xcc   : > { %v2172_v30 = vsub.f32 %v2167_v22, %v2164_v25  ;;  %v822_v32 = vadd.f32 %v814_v26, %v765_v36 }
  0xcd   : > { %v2176_v43 = vadd.f32 %v872_v23, %v823_v37  ;;  %v300_v23 = vld [vmem:[%s2002_s14] sm:$0xff] }
  0xce   : > { %969 = vrot.lane.b32.xlu2 %v2172_v30, %s1887_s29  ;;  %1579 = vmatmul.msk.f32.vlgmr.msra.gmra.mxu0 %vm316_vm0, %v300_v23 }
  0xcf   : > { %v799_v35 = vpop.permute.xlu1 %798  ;;  %3038 = vst [vmem:[#allocation6_spill] sm:$0xff] %v2176_v43 }
  0xd0   : > { %v900_v41 = vpop.permute.xlu2 %899  ;;  %v809_v47 = vsub.f32 %v799_v35, %v2099_v42 }
  0xd1   : > { %v914_v2 = vpop.permute.xlu0 %913  ;;  %v2186_v36 = vsub.f32 %v2025_v18, %v900_v41  ;;  %v2189_v56 = vadd.f32 %v900_v41, %v2025_v18 }
  0xd2   : > { %v2180_v48 = vsub.f32 %v2022_v17, %v914_v2  ;;  %v817_v52 = vand.u32 2147483647, %v809_v47  ;;  %v2183_v54 = vadd.f32 %v914_v2, %v2022_v17 }
  0xd3   : > { %v2197_v58 = vsub.f32 %v2189_v56, %v2186_v36 }
  0xd4   : > { %v825_v57 = vadd.f32 %v817_v52, %v768_v51  ;;  %v2193_v37 = vsub.f32 %v2183_v54, %v2180_v48 }
  0xd5   : > { %961 = vrot.lane.b32.xlu1 %v2197_v58, %s1887_s29 }
  0xd6   : > { %975 = vrot.lane.b32.xlu2 %v2193_v37, %s1887_s29 }
  0xd8   : > { %v836_v17 = vpop.permute.xlu1 %835  ;;  %v906_v61 = vpop.permute.xlu2 %905 }
  0xd9   : > { %v861_v9 = vsub.f32 %v836_v17, %v2115_v62  ;;  %v2205_v51 = vsub.f32 %v2008_v12, %v906_v61  ;;  %v934_v14 = vadd.f32 %v906_v61, %v2008_v12  ;;  %v301_v17 = vld [vmem:[%s2002_s14 + $0x8] sm:$0xff]  ;;  %s1816_s14 = sshra.s32 %s1445_s12, 4  ;;  %s1817_s14 = int_to_ptr.hbm [resolvable:$true] %s1816_s14 }
  0xda   : > { %1580 = vmatmul.msk.f32.gmra.mxu0 %vm316_vm0, %v301_v17  ;;  %v370_v17 = vpop.f32.mrf.mxu2  ;;  %s1818_s21 = scalar_lea.hbm %s1817_s14, 64  ;;  %p1823_p1 = scmp.lt.s32.totalorder %s1817_s14, %s3020_s4 }
  0xdb   : > { %v869_v16 = vand.u32 2147483647, %v861_v9  ;;  %v2209_v21 = vsub.f32 %v934_v14, %v2205_v51  ;;  %p1819_p12 = scmp.ne.s32.totalorder %s1817_s14, %s1818_s21  ;;  %p1824_p2 = scmp.lt.s32.totalorder %s1822_s26, %s1818_s21 }
  0xdd   : > { %v2211_v24 = vadd.f32 %v869_v16, %v820_v7  ;;  %967 = vrot.lane.b32.xlu1 %v2209_v21, %s1887_s29  ;;  %p1820_p13 = pnand %p1819_p12, %p1955_p4  ;;  %p1825_p3 = por %p1824_p2, %p1823_p1 }
  0xdf   : > { %3039 = vst [vmem:[#allocation7_spill] sm:$0xff] %v2211_v24  ;;  %p1821_p0 = pneg %p1820_p13 }
  0xe0   : > { %v844_v26 = vpop.permute.xlu1 %843  ;;  %v912_v28 = vpop.permute.xlu2 %911 }
  0xe1   : > { %v863_v35 = vsub.f32 %v844_v26, %v2115_v62  ;;  %v2218_v41 = vsub.f32 %v2011_v13, %v912_v28  ;;  %v937_v12 = vadd.f32 %v912_v28, %v2011_v13  ;;  %p1826_p5 = pnand %p1825_p3, %p1821_p0 }
  0xe3   : > { %v871_v47 = vand.u32 2147483647, %v863_v35  ;;  %v2223_v2 = vsub.f32 %v937_v12, %v2218_v41 }
  0xe5   : > { %v2225_v7 = vadd.f32 %v871_v47, %v822_v32  ;;  %973 = vrot.lane.b32.xlu1 %v2223_v2, %s1887_s29 }
  0xe7   : > { %3040 = vst [vmem:[#allocation8_spill] sm:$0xff] %v2225_v7 }
  0xe8   : > { %v856_v52 = vpop.permute.xlu1 %855 }
  0xe9   : > { %v866_v61 = vsub.f32 %v856_v52, %v2115_v62 }
  0xeb   : > { %v874_v9 = vand.u32 2147483647, %v866_v61 }
  0xed   : > { %v2232_v16 = vadd.f32 %v874_v9, %v825_v57  ;;  %1005 = vperm.xlu1 %1699, %v2151_v60  }
  0xef   : > { %3041 = vst [vmem:[#allocation9_spill] sm:$0xff] %v2232_v16 }
  0xf0   : > { %v904_v26 = vpop.permute.xlu1 %903 }
  0xf1   : > { %v925_v28 = vsub.f32 %v1987_v3, %v904_v26  ;;  %v933_v32 = vadd.f32 %v904_v26, %v1987_v3 }
  0xf3   : > { %1010 = vperm.xlu2 %1700, %v933_v32   ;;  %v2237_v23 = vsub.f32 %v933_v32, %v925_v28 }
  0xf5   : > { %965 = vrot.lane.b32.xlu0 %v2237_v23, %s1887_s29  ;;  %1015 = vperm.xlu1 %1699, %v934_v14  }
  0xf8   : > { %v910_v35 = vpop.permute.xlu1 %909 }
  0xf9   : > { %v928_v47 = vsub.f32 %v2005_v11, %v910_v35  ;;  %v936_v57 = vadd.f32 %v910_v35, %v2005_v11 }
  0xfb   : > { %1020 = vperm.xlu2 %1700, %v2167_v22   ;;  %v2244_v52 = vsub.f32 %v936_v57, %v928_v47 }
  0xfd   : > { %971 = vrot.lane.b32.xlu0 %v2244_v52, %s1887_s29  ;;  %1030 = vperm.xlu1 %1699, %v937_v12  }
 0x103   : > { %1035 = vperm.xlu2 %1700, %v2183_v54  }
 0x105   : > { %1117 = vperm.xlu0 %1698, %v2151_v60   ;;  %1054 = vperm.xlu1 %1699, %v2148_v59  }
 0x10b   : > { %1059 = vperm.xlu2 %1700, %v925_v28  }
 0x10d   : > { %1137 = vperm.xlu0 %1698, %v937_v12   ;;  %1069 = vperm.xlu1 %1699, %v2164_v25  }
 0x113   : > { %1074 = vperm.xlu2 %1700, %v928_v47  }
 0x115   : > { %1158 = vperm.xlu0 %1698, %v2148_v59   ;;  %1084 = vperm.xlu1 %1699, %v2180_v48  }
 0x11b   : > { %1701 = vset.pattern.permute.xlu2 %v1884_v20 }
 0x11c   : > { %1113 = vperm.xlu2 %1701, %v2189_v56  }
 0x11d   : > { %1170 = vperm.xlu0 %1698, %v2164_v25   ;;  %1702 = vset.pattern.permute.xlu1 %v1884_v20 }
 0x11e   : > { %1121 = vperm.xlu1 %1702, %v933_v32  }
 0x120   : > { %v964_v3 = vpop.permute.xlu2 %963 }
 0x121   : > { %v986_v59 = vmul.f32 %v964_v3, %v2156_v8 }
 0x124   : > { %1125 = vperm.xlu2 %1701, %v934_v14  }
 0x125   : > { %1182 = vperm.xlu0 %1698, %v2180_v48  }
 0x126   : > { %1129 = vperm.xlu1 %1702, %v2167_v22  }
 0x128   : > { %v970_v11 = vpop.permute.xlu2 %969 }
 0x129   : > { %v989_v25 = vmul.f32 %v970_v11, %v2172_v30 }
 0x12c   : > { %1133 = vperm.xlu2 %1701, %v936_v57  }
 0x12d   : > { %1703 = vset.pattern.permute.xlu0 %v1883_v1 }
 0x12e   : > { %657 = vperm.xlu0 %1703, %v2025_v18   ;;  %1141 = vperm.xlu1 %1702, %v2183_v54   ;;  %v939_v54 = vmul.f32 0.5, %v2071_v27 }
 0x130   : > { %v2268_v20 = vpop.permute.xlu2 %975  ;;  %v941_v8 = vrot.slane %v939_v54, 2 }
 0x132   : > { %v2285_v30 = vadd.f32 %v941_v8, %v2071_v27 }
 0x134   : > { %1154 = vperm.xlu2 %1701, %v2186_v36   ;;  %v2294_v61 = vperm.slane %v2285_v30, 0 }
 0x136   : > { %662 = vperm.xlu0 %1703, %v1993_v4   ;;  %1162 = vperm.xlu1 %1702, %v925_v28   ;;  %3042 = vst [vmem:[#allocation10_spill] sm:$0xff] %v2294_v61 }
 0x13c   : > { %1166 = vperm.xlu2 %1701, %v2205_v51  }
 0x13e   : > { %687 = vperm.xlu0 %1703, %v2011_v13   ;;  %1174 = vperm.xlu1 %1702, %v928_v47  }
 0x144   : > { %1178 = vperm.xlu2 %1701, %v2218_v41  }
 0x146   : > { %1000 = vperm.xlu0 %1703, %v2189_v56   ;;  %1704 = vset.pattern.permute.xlu1 %v1883_v1 }
 0x147   : > { %v962_v18 = vpop.permute.xlu1 %961 }
 0x148   : > { %v985_v4 = vmul.f32 %v962_v18, %v2197_v58 }
 0x14a   : > { %1220 = vperm.xlu1 %1704, %v985_v4  }
 0x14b   : > { %v2291_v12 = vpop.f32.mrf.mxu0 }
 0x14c   : > { %1705 = vset.pattern.permute.xlu2 %v1883_v1  ;;  %v364_v1 = vpop.f32.mrf.mxu1 }
 0x14d   : > { %1225 = vperm.xlu2 %1705, %v986_v59   ;;  %v1011_v60 = vpop.permute.xlu2 %1010  ;;  %v1589_v26 = vmul.f32 -1.442695, %v364_v1 }
 0x14e   : > { %1025 = vperm.xlu0 %1703, %v936_v57  }
 0x14f   : > { %v968_v13 = vpop.permute.xlu1 %967 }
 0x150   : > { %v988_v22 = vmul.f32 %v968_v13, %v2209_v21  ;;  %v2289_v21 = vsub.f32 %v2071_v27, %v941_v8  ;;  %v1293_v27 = vmax.f32 %v1011_v60, %v2294_v61  ;;  %v373_v8 = vpop.f32.mrf.mxu2 }
 0x152   : > { %1235 = vperm.xlu1 %1704, %v988_v22  }
 0x154   : > { %v367_v28 = vpop.f32.mrf.mxu1 }
 0x155   : > { %1240 = vperm.xlu2 %1705, %v989_v25   ;;  %v2277_v48 = vpop.permute.xlu2 %1020  ;;  %v1590_v11 = vmul.f32 -1.442695, %v367_v28 }
 0x156   : > { %1049 = vperm.xlu0 %1703, %v2186_v36   ;;  %v1591_v36 = vmul.f32 -1.442695, %v370_v17 }
 0x157   : > { %v974_v56 = vpop.permute.xlu1 %973  ;;  %v361_v3 = vpop.f32.mrf.mxu0 }
 0x158   : > { %v991_v58 = vmul.f32 %v974_v56, %v2223_v2  ;;  %v2299_v2 = vperm.slane %v2289_v21, 0  ;;  %1706 = vpow2.f32 %v1591_v36  ;;  %v1588_v4 = vmul.f32 -1.442695, %v361_v3 }
 0x159   : > { %1708 = vpow2.f32 %v1589_v26  ;;  %v1592_v36 = vmul.f32 -1.442695, %v373_v8  ;;  %v2354_v8 = vand.u32 2147483647, %v745_v40 }
 0x15a   : > { %3043 = vst [vmem:[#allocation11_spill] sm:$0xff] %v2299_v2  ;;  %1710 = vpow2.f32 %v1590_v11 }
 0x15b   : > { %1712 = vpow2.f32 %v1588_v4 }
 0x15d   : > { %1250 = vperm.xlu2 %1705, %v991_v58   ;;  %v2282_v14 = vpop.permute.xlu2 %1035 }
 0x15e   : > { %1064 = vperm.xlu0 %1703, %v2205_v51   ;;  %v1041_v51 = vmin.f32 %v1011_v60, %v2294_v61  ;;  %v1707_v25 = vpop.eup %1706 }
 0x15f   : > { %v2296_v9 = vpop.permute.xlu1 %1005  ;;  %v1709_v54 = vpop.eup %1708 }
 0x160   : > { %v2318_v58 = vadd.f32 1.0, %v1709_v54  ;;  %v1711_v17 = vpop.eup %1710 }
 0x161   : > { %v1713_v28 = vpop.eup %1712 }
 0x162   : > { %vm449_vm1 = vweird.f32 %v2318_v58  ;;  %v453_v0 = vand.u32 2147483647, %v2318_v58 }
 0x164   : > { %vm2437_vm5 = vcmp.eq.f32.partialorder %v453_v0, 8.507059e+37 }
 0x165   : > { %v1060_v32 = vpop.permute.xlu2 %1059 }
 0x166   : > { %v1090_v35 = vmax.f32 %v1060_v32, %v2299_v2  ;;  %v1301_v47 = vmin.f32 %v1060_v32, %v2299_v2  ;;  %1079 = vperm.xlu0 %1703, %v2218_v41   ;;  %v2315_v41 = vadd.f32 1.0, %v1707_v25  ;;  %v2324_v32 = vperm.slane %v2285_v30, 1 }
 0x167   : > { %v966_v57 = vpop.permute.xlu0 %965  ;;  %v2310_v13 = vpop.permute.xlu1 %1015 }
 0x168   : > { %v2306_v18 = vsub.f32 %v1041_v51, %v1090_v35  ;;  %v2308_v59 = vsub.f32 %v1293_v27, %v1301_v47  ;;  %3044 = vst [vmem:[#allocation12_spill] sm:$0xff] %v2310_v13  ;;  %v987_v60 = vmul.f32 %v966_v57, %v2237_v23  ;;  %1714 = vrcp.f32 %v2315_v41  ;;  %v376_v23 = vpop.f32.mrf.mxu3 }
 0x169   : > { %v1593_v51 = vmul.f32 -1.442695, %v376_v23  ;;  %v992_v27 = vmul.f32 %v2268_v20, %v2193_v37  ;;  %1716 = vrcp.f32 %v2318_v58  ;;  %v2333_v47 = vadd.f32 1.0, %v1713_v28 }
 0x16a   : > { %1718 = vpow2.f32 %v1592_v36  ;;  %v2365_v36 = vand.u32 2147483647, %v803_v46  ;;  %v2402_v46 = vand.u32 2147483647, %v865_v19  ;;  %v483_v19 = vand.u32 2147483647, %v2315_v41 }
 0x16b   : > { %1720 = vpow2.f32 %v1593_v51  ;;  %vm479_vm2 = vweird.f32 %v2315_v41  ;;  %vm434_vm10 = vweird.f32 %v2333_v47 }
 0x16c   : > { %3048 = vst [vmem:[#allocation16_spill] sm:$0xff] %v2402_v46  ;;  %vm2452_vm8 = vcmp.eq.f32.partialorder %v483_v19, 8.507059e+37  ;;  %v1046_v19 = vmin.f32 %v2282_v14, %v2294_v61 }
 0x16d   : > { %v2313_v22 = vpop.permute.xlu2 %1074 }
 0x16e   : > { %3045 = vst [vmem:[#allocation13_spill] sm:$0xff] %v2313_v22  ;;  %1230 = vperm.xlu0 %1703, %v987_v60   ;;  %v2341_v37 = vpop.eup %1714 }
 0x16f   : > { %v972_v56 = vpop.permute.xlu0 %971  ;;  %v2320_v26 = vpop.permute.xlu1 %1030  ;;  %v475_v60 = vmul.f32 %v2341_v37, %v2315_v41  ;;  %vm480_vm3 = vweird.f32 %v2341_v37 }
 0x170   : > { %v990_v1 = vmul.f32 %v972_v56, %v2244_v52  ;;  %3046 = vst [vmem:[#allocation14_spill] sm:$0xff] %v2320_v26  ;;  %v2329_v52 = vadd.f32 1.0, %v1711_v17  ;;  %v2347_v4 = vpop.eup %1716  ;;  %v379_v57 = vpop.f32.mrf.mxu3  ;;  %vm2448_vm7 = vmor %vm479_vm2, %vm480_vm3 }
 0x171   : > { %v1719_v25 = vpop.eup %1718  ;;  %v445_v56 = vmul.f32 %v2347_v4, %v2318_v58  ;;  %v476_v3 = vsub.f32 1.0, %v475_v60  ;;  %v2397_v60 = vand.u32 2147483647, %v860_v6  ;;  %v1594_v42 = vmul.f32 -1.442695, %v379_v57 }
 0x172   : > { %1245 = vperm.xlu1 %1704, %v990_v1   ;;  %1722 = vrcp.f32 %v2329_v52  ;;  %v1721_v54 = vpop.eup %1720  ;;  %v2367_v28 = vadd.f32 1.0, %v1719_v25  ;;  %v2385_v25 = vand.u32 2147483647, %v808_v55  ;;  %v470_v57 = vand.u32 2147483648, %v2329_v52 }
 0x173   : > { %1724 = vrcp.f32 %v2333_v47  ;;  %v2392_v23 = vadd.f32 1.0, %v1721_v54  ;;  %v446_v44 = vsub.f32 1.0, %v445_v56  ;;  %v477_v6 = vmul.f32 %v2341_v37, %v476_v3 }
 0x174   : > { %3047 = vst [vmem:[#allocation15_spill] sm:$0xff] %v2385_v25  ;;  %1726 = vrcp.f32 %v2367_v28  ;;  %v485_v54 = vand.u32 2147483648, %v2315_v41  ;;  %vm450_vm4 = vweird.f32 %v2347_v4  ;;  %vm464_vm6 = vweird.f32 %v2329_v52 }
 0x175   : > { %1728 = vrcp.f32 %v2392_v23  ;;  %v447_v56 = vmul.f32 %v2347_v4, %v446_v44  ;;  %v3056_v41 = vsub.f32 %v2140_v49, %v2090_v38  ;;  %vm2474_vm9 = vmor %vm449_vm1, %vm450_vm4  ;;  %vm494_vm1 = vweird.f32 %v2367_v28 }
 0x176   : > { %1255 = vperm.xlu0 %1703, %v992_v27   ;;  %v2331_v35 = vpop.permute.xlu2 %1113  ;;  %v455_v27 = vand.u32 2147483648, %v2318_v58  ;;  %1730 = vpow2.f32 %v1594_v42  ;;  %v1587_v42 = vmul.f32 -1.442695, %v2291_v12  ;;  %v486_v0 = vor.u32 1.1754944e-38, %v485_v54 }
 0x177   : > { %v2339_v11 = vpop.permute.xlu0 %1117  ;;  %v2344_v20 = vpop.permute.xlu1 %1054  ;;  %v448_v43 = vadd.f32 %v2347_v4, %v447_v56  ;;  %v2464_v24 = vand.u32 2147483647, %v3056_v41  ;;  %v2489_v41 = vperm.slane %v2289_v21, 1  ;;  %vm509_vm4 = vweird.f32 %v2392_v23 }
 0x178   : > { %v2360_v17 = vpop.eup %1722  ;;  %v2413_v5 = vor.u32 1.1754944e-38, %v455_v27  ;;  %1732 = vpow2.f32 %v1587_v42 }
 0x179   : > { %v2375_v51 = vpop.eup %1724  ;;  %v460_v53 = vmul.f32 %v2360_v17, %v2329_v52  ;;  %vm465_vm12 = vweird.f32 %v2360_v17  ;;  %v452_v50 = vsel %vm2474_vm9, %v2347_v4, %v448_v43 }
 0x17a   : > { %v430_v63 = vmul.f32 %v2375_v51, %v2333_v47  ;;  %vm435_vm11 = vweird.f32 %v2375_v51  ;;  %vm2531_vm14 = vmor %vm464_vm6, %vm465_vm12 }
 0x17b   : > { %v461_v3 = vsub.f32 1.0, %v460_v53  ;;  %v478_v53 = vadd.f32 %v2341_v37, %v477_v6  ;;  %v2457_v6 = vor.u32 1.1754944e-38, %v470_v57  ;;  %v1298_v57 = vmax.f32 %v2282_v14, %v2294_v61  ;;  %vm2523_vm13 = vmor %vm434_vm10, %vm435_vm11 }
 0x17c   : > { %v431_v33 = vsub.f32 1.0, %v430_v63  ;;  %v2444_v63 = vpop.eup %1726 }
 0x17d   : > { %3055 = vst [vmem:[#allocation17_spill] sm:$0xff] %v2457_v6  ;;  %v462_v12 = vmul.f32 %v2360_v17, %v461_v3  ;;  %v2468_v26 = vpop.eup %1728  ;;  %v490_v3 = vmul.f32 %v2444_v63, %v2367_v28  ;;  %v482_v58 = vsel %vm2448_vm7, %v2341_v37, %v478_v53  ;;  %v440_v37 = vand.u32 2147483648, %v2333_v47 }
 0x17e   : > { %v2358_v1 = vpop.permute.xlu2 %1125  ;;  %3057 = vst [vmem:[#allocation18_spill] sm:$0xff] %v2468_v26  ;;  %v432_v38 = vmul.f32 %v2375_v51, %v431_v33  ;;  %v1731_v16 = vpop.eup %1730  ;;  %v487_v43 = vsel %vm2452_vm8, %v486_v0, %v482_v58 }
 0x17f   : > { %v2373_v40 = vpop.permute.xlu0 %1137  ;;  %v2406_v55 = vpop.permute.xlu1 %1069  ;;  %v2513_v13 = vadd.f32 %v2360_v17, %v462_v12  ;;  %v491_v22 = vsub.f32 1.0, %v490_v3  ;;  %v2515_v7 = vadd.f32 1.0, %v1731_v16  ;;  %v3066_v16 = vsub.f32 %v2138_v45, %v2115_v62 }
 0x180   : > { %v433_v42 = vadd.f32 %v2375_v51, %v432_v38  ;;  %v538_v0 = vmul.f32 %v487_v43, %v487_v43  ;;  %v3069_v38 = vmax.f32 %v2331_v35, %v2324_v32  ;;  %v1733_v58 = vpop.eup %1732  ;;  %v441_v45 = vor.u32 1.1754944e-38, %v440_v37 }
 0x181   : > { %3061 = vst [vmem:[#allocation20_spill] sm:$0xff] %v2515_v7  ;;  %v2538_v34 = vand.u32 2147483647, %v3066_v16  ;;  %1734 = vrcp.f32 %v2515_v7  ;;  %v554_v44 = vsub.f32 1.0, %v487_v43  ;;  %v1092_v4 = vmax.f32 %v2406_v55, %v2299_v2 }
 0x182   : > { %v3074_v16 = vmin.f32 %v2358_v1, %v2324_v32 }
 0x186   : > { %v2428_v27 = vpop.permute.xlu2 %1133 }
 0x187   : > { %v2434_v31 = vpop.permute.xlu0 %1158  ;;  %v1085_v15 = vpop.permute.xlu1 %1084  ;;  %v3090_v12 = vmax.f32 %v2428_v27, %v2324_v32 }
 0x188   : > { %v1095_v49 = vmax.f32 %v1085_v15, %v2299_v2  ;;  %v1306_v56 = vmin.f32 %v1085_v15, %v2299_v2  ;;  %v2500_v15 = vmul.f32 %v2468_v26, %v2392_v23 }
 0x18a   : > { %v2493_v14 = vsub.f32 %v1046_v19, %v1095_v49  ;;  %v2495_v33 = vsub.f32 %v1298_v57, %v1306_v56  ;;  %3060 = vst [vmem:[#allocation19_spill] sm:$0xff] %v2500_v15  ;;  %v438_v19 = vand.u32 2147483647, %v2333_v47  ;;  %v3067_v47 = vmin.f32 %v2331_v35, %v2324_v32 }
 0x18b   : > { %v437_v35 = vsel %vm2523_vm13, %v2375_v51, %v433_v42  ;;  %v1043_v51 = vmin.f32 %v2277_v48, %v2294_v61  ;;  %v1295_v42 = vmax.f32 %v2277_v48, %v2294_v61  ;;  %v993_v48 = vsub.f32 %v2285_v30, %v2289_v21 }
 0x18c   : > { %vm439_vm15 = vcmp.eq.f32.partialorder %v438_v19, 8.507059e+37  ;;  %v2580_v19 = vadd.f32 1.0, %v1733_v58  ;;  %v1292_v58 = vmax.f32 %v2296_v9, %v2294_v61  ;;  %v3076_v30 = vmax.f32 %v2358_v1, %v2324_v32 }
 0x18d   : > { %v1332_v1 = vmin.f32 %v2434_v31, %v2489_v41 }
 0x18e   : > { %v1155_v53 = vpop.permute.xlu2 %1154  ;;  %1736 = vrcp.f32 %v2580_v19  ;;  %vm419_vm2 = vweird.f32 %v2580_v19 }
 0x18f   : > { %v1186_v57 = vmax.f32 %v1155_v53, %v2489_v41  ;;  %v1331_v49 = vmin.f32 %v1155_v53, %v2489_v41  ;;  %v2510_v56 = vpop.permute.xlu0 %1170 }
 0x191   : > { %v2543_v54 = vsub.f32 %v3067_v47, %v1186_v57  ;;  %v2548_v3 = vsub.f32 %v3069_v38, %v1331_v49  ;;  %v2557_v57 = vsel %vm2437_vm5, %v2413_v5, %v452_v50  ;;  %v2562_v49 = vpop.permute.xlu1 %1121  ;;  %v2565_v47 = vmul.f32 %v2444_v63, %v491_v22 }
 0x192   : > { %3071 = vst [vmem:[#allocation23_spill] sm:$0xff] %v2557_v57  ;;  %v2572_v5 = vmul.f32 -0.75, %v538_v0  ;;  %v610_v50 = vadd.f32 1e-06, %v487_v43  ;;  %v1040_v22 = vmin.f32 %v2296_v9, %v2294_v61  ;;  %v2584_v38 = vsel %vm439_vm15, %v441_v45, %v437_v35 }
 0x193   : > { %3068 = vst [vmem:[#allocation21_spill] sm:$0xff] %v2543_v54  ;;  %v1303_v43 = vmin.f32 %v2406_v55, %v2299_v2  ;;  %v1089_v45 = vmax.f32 %v2344_v20, %v2299_v2  ;;  %v551_v9 = vsub.f32 1.0, %v2584_v38  ;;  %v562_v54 = vadd.f32 1e-06, %v554_v44 }
 0x194   : > { %3070 = vst [vmem:[#allocation22_spill] sm:$0xff] %v2548_v3  ;;  %v2615_v3 = vpop.eup %1734  ;;  %v607_v26 = vadd.f32 1e-06, %v2584_v38  ;;  %vm495_vm5 = vweird.f32 %v2444_v63 }
 0x195   : > { %3072 = vst [vmem:[#allocation24_spill] sm:$0xff] %v2565_v47  ;;  %v1311_v61 = vsub.f32 %v1295_v42, %v1303_v43  ;;  %v1097_v42 = vsub.f32 %v1040_v22, %v1089_v45  ;;  %v559_v43 = vadd.f32 1e-06, %v551_v9  ;;  %v2635_v25 = vpop.eup %1736  ;;  %v3080_v45 = vmax.f32 %v2373_v40, %v2324_v32  ;;  %vm2765_vm7 = vmor %vm494_vm1, %vm495_vm5 }
 0x196   : > { %3073 = vst [vmem:[#allocation25_spill] sm:$0xff] %v2572_v5  ;;  %v1167_v62 = vpop.permute.xlu2 %1166  ;;  %vm420_vm3 = vweird.f32 %v2635_v25 }
 0x197   : > { %v1189_v0 = vmax.f32 %v1167_v62, %v2489_v41  ;;  %v1334_v46 = vmin.f32 %v1167_v62, %v2489_v41  ;;  %v2590_v53 = vpop.permute.xlu0 %1182  ;;  %v1300_v62 = vmin.f32 %v2344_v20, %v2299_v2  ;;  %3078 = vst [vmem:[#allocation28_spill] sm:$0xff] %v2615_v3  ;;  %v1100_v20 = vsub.f32 %v1043_v51, %v1092_v4  ;;  %vm2741_vm6 = vmor %vm419_vm2, %vm420_vm3 }
 0x198   : > { %v1193_v35 = vmax.f32 %v2590_v53, %v2489_v41  ;;  %v1338_v55 = vmin.f32 %v2590_v53, %v2489_v41  ;;  %v1146_v53 = vmin.f32 %v2339_v11, %v2324_v32  ;;  %v1324_v51 = vmax.f32 %v2339_v11, %v2324_v32 }
 0x199   : > { %v2607_v37 = vsub.f32 %v3074_v16, %v1189_v0  ;;  %v2612_v21 = vsub.f32 %v3076_v30, %v1334_v46  ;;  %v1187_v16 = vmax.f32 %v2434_v31, %v2489_v41  ;;  %v1130_v46 = vpop.permute.xlu1 %1129  ;;  %v995_v0 = vrot.slane %v993_v48, 1 }
 0x19a   : > { %v1190_v30 = vmax.f32 %v2510_v56, %v2489_v41  ;;  %v1327_v2 = vmax.f32 %v1130_v46, %v2324_v32  ;;  %v1308_v4 = vsub.f32 %v1292_v58, %v1300_v62  ;;  %v1108_v3 = vmax.f32 %v1100_v20, 0.0 }
 0x19b   : > { %3075 = vst [vmem:[#allocation26_spill] sm:$0xff] %v2607_v37  ;;  %v1149_v37 = vmin.f32 %v1130_v46, %v2324_v32  ;;  %v1195_v15 = vsub.f32 %v1146_v53, %v1187_v16  ;;  %v1340_v47 = vsub.f32 %v1324_v51, %v1332_v1  ;;  %v1319_v46 = vmax.f32 %v1311_v61, 0.0 }
 0x19c   : > { %3077 = vst [vmem:[#allocation27_spill] sm:$0xff] %v2612_v21  ;;  %v1335_v21 = vmin.f32 %v2510_v56, %v2489_v41  ;;  %v997_v58 = vmul.f32 %v995_v0, %v993_v48  ;;  %1738 = vlog2.f32 %v559_v43  ;;  %v1105_v0 = vmax.f32 %v1097_v42, 0.0 }
 0x19d   : > { %v1198_v31 = vsub.f32 %v1149_v37, %v1190_v30  ;;  %v3079_v37 = vmin.f32 %v2373_v40, %v2324_v32  ;;  %1740 = vlog2.f32 %v607_v26  ;;  %v1203_v61 = vmax.f32 %v1195_v15, 0.0 }
 0x19e   : > { %v1343_v7 = vsub.f32 %v1327_v2, %v1335_v21  ;;  %v1179_v57 = vpop.permute.xlu2 %1178  ;;  %1742 = vlog2.f32 %v610_v50  ;;  %v1348_v48 = vmax.f32 %v1340_v47, 0.0  ;;  %v1316_v30 = vmax.f32 %v1308_v4, 0.0 }
 0x19f   : > { %v1192_v56 = vmax.f32 %v1179_v57, %v2489_v41  ;;  %v1337_v5 = vmin.f32 %v1179_v57, %v2489_v41  ;;  %v1206_v6 = vmax.f32 %v1198_v31, 0.0  ;;  %v594_v57 = vmul.f32 %v554_v44, %v554_v44 }
 0x1a0   : > { %v1351_v11 = vmax.f32 %v1343_v7, 0.0  ;;  %v658_v22 = vpop.permute.xlu0 %657  ;;  %1744 = vlog2.f32 %v562_v54  ;;  %v535_v26 = vmul.f32 %v2584_v38, %v2584_v38  ;;  %v591_v47 = vmul.f32 %v551_v9, %v551_v9 }
 0x1a1   : > { %v2640_v2 = vsub.f32 %v3079_v37, %v1192_v56  ;;  %v2645_v62 = vsub.f32 %v3080_v45, %v1337_v5  ;;  %v696_v21 = vsub.f32 %v658_v22, %v2075_v29  ;;  %v2650_v7 = vmul.f32 %v1206_v6, %v1108_v3  ;;  %v1142_v16 = vpop.permute.xlu1 %1141 }
 0x1a2   : > { %v2648_v53 = vmul.f32 %v1351_v11, %v1319_v46  ;;  %v1152_v1 = vmin.f32 %v1142_v16, %v2324_v32  ;;  %v1330_v40 = vmax.f32 %v1142_v16, %v2324_v32  ;;  %v2654_v5 = vperm.slane %v997_v58, 0  ;;  %v1739_v50 = vpop.eup %1738 }
 0x1a3   : > { %v704_v20 = vand.u32 2147483647, %v696_v21  ;;  %v2659_v6 = vmul.f32 -0.25, %v594_v57  ;;  %v2661_v54 = vmul.f32 %v1348_v48, %v1316_v30  ;;  %v1111_v51 = vmax.f32 %v2493_v14, 0.0  ;;  %v1741_v4 = vpop.eup %1740 }
 0x1a4   : > { %v1201_v15 = vsub.f32 %v1152_v1, %v1193_v35  ;;  %v1346_v3 = vsub.f32 %v1330_v40, %v1338_v55  ;;  %v2665_v31 = vmul.f32 %v1203_v61, %v1105_v0  ;;  %v1743_v55 = vpop.eup %1742  ;;  %v415_v9 = vmul.f32 %v2635_v25, %v2580_v19 }
 0x1a5   : > { %v761_v44 = vadd.f32 %v2354_v8, %v704_v20  ;;  %v1322_v8 = vmax.f32 %v2495_v33, 0.0  ;;  %v543_v14 = vmul.f32 -0.75, %v535_v26  ;;  %v599_v37 = vmul.f32 -0.25, %v591_v47 }
 0x1a6   : > { %v1209_v56 = vmax.f32 %v1201_v15, 0.0  ;;  %v1354_v38 = vmax.f32 %v1346_v3, 0.0  ;;  %v1745_v22 = vpop.eup %1744  ;;  %1746 = vrcp.f32 %v2661_v54  ;;  %v569_v21 = vmul.f32 0.6931472, %v1739_v50 }
 0x1a7   : > { %v818_v43 = vadd.f32 %v2390_v39, %v761_v44  ;;  %v1226_v42 = vpop.permute.xlu2 %1225  ;;  %v617_v57 = vmul.f32 0.6931472, %v1741_v4  ;;  %v1147_v16 = vmin.f32 %v2562_v49, %v2324_v32  ;;  %v1325_v1 = vmax.f32 %v2562_v49, %v2324_v32 }
 0x1a8   : > { %v1260_v46 = vadd.f32 %v2654_v5, %v1226_v42  ;;  %v663_v35 = vpop.permute.xlu0 %662  ;;  %v2675_v58 = vmul.f32 %v1354_v38, %v1322_v8  ;;  %v2678_v45 = vmul.f32 %v1209_v56, %v1111_v51  ;;  %v623_v30 = vmul.f32 0.6931472, %v1743_v55 }
 0x1a9   : > { %v2672_v11 = vadd.f32 %v2538_v34, %v818_v43  ;;  %v697_v39 = vsub.f32 %v663_v35, %v2075_v29  ;;  %v1163_v48 = vpop.permute.xlu1 %1162  ;;  %v3081_v34 = vand.u32 2147483647, %v2329_v52  ;;  %v1106_v44 = vmax.f32 %v2306_v18, 0.0 }
 0x1aa   : > { %v1268_v33 = vsub.f32 %v1260_v46, %v2665_v31  ;;  %v1188_v40 = vmax.f32 %v1163_v48, %v2489_v41  ;;  %v1333_v0 = vmin.f32 %v1163_v48, %v2489_v41  ;;  %v1317_v26 = vmax.f32 %v2308_v59, 0.0 }
 0x1ab   : > { %v705_v61 = vand.u32 2147483647, %v697_v39  ;;  %vm2683_vm0 = vcmp.eq.f32.partialorder %v3081_v34, 8.507059e+37  ;;  %v416_v15 = vsub.f32 1.0, %v415_v9  ;;  %v583_v49 = vmul.f32 %v569_v21, %v543_v14 }
 0x1ac   : > { %1748 = vrcp.f32 %v1268_v33  ;;  %v1196_v3 = vsub.f32 %v1147_v16, %v1188_v40  ;;  %v1341_v47 = vsub.f32 %v1325_v1, %v1333_v0  ;;  %v631_v50 = vmul.f32 %v617_v57, %v599_v37  ;;  %v1747_v8 = vpop.eup %1746 }
 0x1ad   : > { %v762_v52 = vadd.f32 %v2419_v10, %v705_v61  ;;  %1750 = vrcp.f32 %v2648_v53  ;;  %v1364_v42 = vsub.f32 %v2661_v54, %v1268_v33  ;;  %v575_v56 = vmul.f32 0.6931472, %v1745_v22 }
 0x1ae   : > { %v1204_v18 = vmax.f32 %v1196_v3, 0.0  ;;  %v1349_v4 = vmax.f32 %v1341_v47, 0.0  ;;  %v417_v35 = vmul.f32 %v2635_v25, %v416_v15  ;;  %v423_v14 = vand.u32 2147483647, %v2580_v19 }
 0x1af   : > { %v819_v51 = vadd.f32 %v2365_v36, %v762_v52  ;;  %v1241_v43 = vpop.permute.xlu2 %1240  ;;  %v639_v39 = vsub.f32 %v631_v50, %v583_v49  ;;  %v1380_v33 = vmul.f32 %v1747_v8, %v1364_v42  ;;  %v425_v61 = vand.u32 2147483648, %v2580_v19  ;;  %v3089_v52 = vld [vmem:[#allocation15_spill] sm:$0xff]  ;;  %v3092_v19 = vld [vmem:[#allocation24_spill] sm:$0xff]  ;;  %v3095_v42 = vld [vmem:[#allocation18_spill] sm:$0xff] }
 0x1b0   : > { %v1263_v10 = vadd.f32 %v2654_v5, %v1241_v43  ;;  %v688_v59 = vpop.permute.xlu0 %687  ;;  %v2705_v36 = vmul.f32 %v1349_v4, %v1317_v26  ;;  %v2708_v55 = vmul.f32 %v1204_v18, %v1106_v44  ;;  %v418_v16 = vadd.f32 %v2635_v25, %v417_v35 }
 0x1b1   : > { %v876_v38 = vadd.f32 %v2397_v60, %v819_v51  ;;  %v702_v46 = vsub.f32 %v688_v59, %v2075_v29  ;;  %v1175_v60 = vpop.permute.xlu1 %1174  ;;  %v634_v20 = vmul.f32 %v623_v30, %v2659_v6  ;;  %v493_v50 = vadd.f32 %v2444_v63, %v3092_v19  ;;  %v3093_v51 = vld [vmem:[#allocation19_spill] sm:$0xff] }
 0x1b2   : > { %v1271_v54 = vsub.f32 %v1263_v10, %v2650_v7  ;;  %v1749_v9 = vpop.eup %1748  ;;  %v1191_v21 = vmax.f32 %v1175_v60, %v2489_v41  ;;  %v1336_v34 = vmin.f32 %v1175_v60, %v2489_v41  ;;  %v3086_v41 = vld [vmem:[#allocation17_spill] sm:$0xff]  ;;  %v3094_v43 = vsub.f32 1.0, %v3093_v51  ;;  %v3096_v10 = vld [vmem:[#allocation16_spill] sm:$0xff] }
 0x1b3   : > { %v710_v22 = vand.u32 2147483647, %v702_v46  ;;  %v1284_v29 = vmul.f32 %v1749_v9, %v2665_v31  ;;  %v1751_v57 = vpop.eup %1750  ;;  %v1404_v47 = vadd.f32 %v876_v38, %v639_v39  ;;  %v426_v4 = vor.u32 1.1754944e-38, %v425_v61 }
 0x1b4   : > { %v1367_v37 = vsub.f32 %v2648_v53, %v1271_v54  ;;  %1752 = vrcp.f32 %v1271_v54  ;;  %v3084_v53 = vmin.f32 %v2428_v27, %v2324_v32  ;;  %v2749_v15 = vsub.f32 %v3090_v12, %v1336_v34 }
 0x1b5   : > { %v767_v48 = vadd.f32 %v2464_v24, %v710_v22  ;;  %v1388_v1 = vsub.f32 %v1284_v29, %v1380_v33  ;;  %v3085_v24 = vsel %vm2531_vm14, %v2360_v17, %v2513_v13  ;;  %v3091_v13 = vld [vmem:[#allocation25_spill] sm:$0xff]  ;;  %v507_v18 = vmul.f32 %v3095_v42, %v3094_v43  ;;  %v3106_v29 = vld [vmem:[#allocation23_spill] sm:$0xff] }
 0x1b6   : > { %v1383_v31 = vmul.f32 %v1751_v57, %v1367_v37  ;;  %v2726_v40 = vsub.f32 %v3084_v53, %v1191_v21  ;;  %v472_v0 = vsel %vm2683_vm0, %v3086_v41, %v3085_v24  ;;  %v586_v17 = vmul.f32 %v575_v56, %v3091_v13  ;;  %v3109_v41 = vld [vmem:[#allocation8_spill] sm:$0xff]  ;;  %v3114_v13 = vld [vmem:[#allocation11_spill] sm:$0xff] }
 0x1b7   : > { %v824_v26 = vadd.f32 %v3089_v52, %v767_v48  ;;  %v1396_v3 = vsub.f32 0.0, %v1388_v1  ;;  %v553_v6 = vsub.f32 1.0, %v472_v0  ;;  %v422_v30 = vsel %vm2741_vm6, %v2635_v25, %v418_v16  ;;  %v3107_v48 = vld [vmem:[#allocation20_spill] sm:$0xff] }
 0x1b8   : > { %v2753_v49 = vpop.permute.xlu0 %1000  ;;  %vm2772_vm8 = vcmp.eq.f32.partialorder %v423_v14, 8.507059e+37  ;;  %v3101_v38 = vand.u32 2147483647, %v2367_v28  ;;  %v3104_v35 = vand.u32 2147483648, %v2367_v28  ;;  %v513_v9 = vand.u32 2147483647, %v2392_v23 }
 0x1b9   : > { %v2761_v32 = vadd.f32 %v3096_v10, %v824_v26  ;;  %v1412_v8 = vadd.f32 %v1404_v47, %v1396_v3  ;;  %v609_v39 = vadd.f32 1e-06, %v472_v0  ;;  %vm510_vm10 = vweird.f32 %v3095_v42  ;;  %v3116_v47 = vld [vmem:[#allocation10_spill] sm:$0xff] }
 0x1ba   : > { %v1753_v56 = vpop.eup %1752  ;;  %vm2778_vm9 = vcmp.eq.f32.partialorder %v3101_v38, 8.507059e+37  ;;  %v501_v54 = vor.u32 1.1754944e-38, %v3104_v35  ;;  %v3105_v25 = vand.u32 2147483648, %v2392_v23  ;;  %v642_v22 = vsub.f32 %v634_v20, %v586_v17  ;;  %vm2821_vm12 = vmor %vm509_vm4, %vm510_vm10  ;;  %v3115_v17 = vld [vmem:[#allocation13_spill] sm:$0xff] }
 0x1bb   : > { %1420 = vst [vmem:[%s2790_s7 + $0x8] sm:$0xff] %v1412_v8  ;;  %v1287_v60 = vmul.f32 %v1753_v56, %v2650_v7  ;;  %v497_v28 = vsel %vm2765_vm7, %v2444_v63, %v493_v50  ;;  %v536_v33 = vmul.f32 %v3106_v29, %v3106_v29  ;;  %v2800_v37 = vsub.f32 1.0, %v3106_v29  ;;  %v3108_v7 = vld [vmem:[#allocation28_spill] sm:$0xff] }
 0x1bc   : > { %v2788_v14 = vor.u32 1.1754944e-38, %v3105_v25  ;;  %v2804_v21 = vsel %vm2772_vm8, %v426_v4, %v422_v30  ;;  %v2807_v57 = vadd.f32 %v3095_v42, %v507_v18  ;;  %v561_v61 = vadd.f32 1e-06, %v553_v6 }
 0x1bd   : > { %v520_v34 = vmul.f32 %v3108_v7, %v3107_v48  ;;  %v1391_v16 = vsub.f32 %v1287_v60, %v1383_v31  ;;  %v537_v1 = vmul.f32 %v472_v0, %v472_v0  ;;  %v593_v63 = vmul.f32 %v553_v6, %v553_v6 }
 0x1be   : > { %1754 = vlog2.f32 %v609_v39  ;;  %v528_v53 = vand.u32 2147483647, %v3107_v48  ;;  %vm524_vm11 = vweird.f32 %v3107_v48  ;;  %v502_v24 = vsel %vm2778_vm9, %v501_v54, %v497_v28 }
 0x1bf   : > { %v1407_v44 = vadd.f32 %v3109_v41, %v642_v22  ;;  %v550_v52 = vsub.f32 1.0, %v2804_v21  ;;  %v1399_v26 = vsub.f32 0.0, %v1391_v16  ;;  %vm2825_vm13 = vcmp.eq.f32.partialorder %v513_v9, 8.507059e+37 }
 0x1c0   : > { %v1026_v12 = vpop.permute.xlu0 %1025  ;;  %v1093_v20 = vmax.f32 %v3115_v17, %v3114_v13  ;;  %v1304_v3 = vmin.f32 %v3115_v17, %v3114_v13  ;;  %1756 = vlog2.f32 %v561_v61  ;;  %v521_v23 = vsub.f32 1.0, %v520_v34 }
 0x1c1   : > { %v1044_v19 = vmin.f32 %v1026_v12, %v3116_v47  ;;  %v1296_v50 = vmax.f32 %v1026_v12, %v3116_v47  ;;  %v530_v51 = vand.u32 2147483648, %v3107_v48  ;;  %v1415_v43 = vadd.f32 %v1407_v44, %v1399_v26  ;;  %v3121_v48 = vld [vmem:[#allocation21_spill] sm:$0xff] }
 0x1c2   : > { %v555_v18 = vsub.f32 1.0, %v502_v24  ;;  %v606_v4 = vadd.f32 1e-06, %v2804_v21  ;;  %v512_v6 = vsel %vm2821_vm12, %v3095_v42, %v2807_v57  ;;  %v2841_v30 = vmul.f32 -0.75, %v537_v1 }
 0x1c3   : > { %v1101_v10 = vsub.f32 %v1044_v19, %v1093_v20  ;;  %v1312_v27 = vsub.f32 %v1296_v50, %v1304_v3  ;;  %v601_v59 = vmul.f32 -0.25, %v593_v63  ;;  %v558_v8 = vadd.f32 1e-06, %v550_v52  ;;  %1423 = vst [vmem:[%s2790_s7 + $0x20] sm:$0xff] %v1415_v43 }
 0x1c4   : > { %v1755_v56 = vpop.eup %1754  ;;  %v1207_v38 = vmax.f32 %v2726_v40, 0.0  ;;  %v1352_v46 = vmax.f32 %v2749_v15, 0.0  ;;  %v522_v9 = vmul.f32 %v3108_v7, %v521_v23  ;;  %v531_v39 = vor.u32 1.1754944e-38, %v530_v51  ;;  %v3122_v51 = vld [vmem:[#allocation22_spill] sm:$0xff] }
 0x1c5   : > { %v1109_v35 = vmax.f32 %v1101_v10, 0.0  ;;  %v1320_v54 = vmax.f32 %v1312_v27, 0.0  ;;  %v539_v25 = vmul.f32 %v502_v24, %v502_v24  ;;  %v611_v22 = vadd.f32 1e-06, %v502_v24 }
 0x1c6   : > { %vm2847_vm14 = vcmp.eq.f32.partialorder %v528_v53, 8.507059e+37  ;;  %v563_v42 = vadd.f32 1e-06, %v555_v18  ;;  %1758 = vlog2.f32 %v606_v4  ;;  %v1757_v40 = vpop.eup %1756  ;;  %vm525_vm15 = vweird.f32 %v3108_v7 }
 0x1c7   : > { %v2851_v28 = vmul.f32 %v1352_v46, %v1320_v54  ;;  %v2853_v57 = vmul.f32 %v1207_v38, %v1109_v35  ;;  %v595_v15 = vmul.f32 %v555_v18, %v555_v18  ;;  %v2856_v61 = vmul.f32 -0.75, %v536_v33  ;;  %v1221_v33 = vpop.permute.xlu1 %1220  ;;  %vm2871_vm0 = vmor %vm524_vm11, %vm525_vm15 }
 0x1c8   : > { %1760 = vlog2.f32 %v558_v8  ;;  %v1050_v34 = vpop.permute.xlu0 %1049  ;;  %v1039_v16 = vmin.f32 %v2753_v49, %v3116_v47  ;;  %v1291_v1 = vmax.f32 %v2753_v49, %v3116_v47  ;;  %v621_v24 = vmul.f32 0.6931472, %v1755_v56 }
 0x1c9   : > { %v1088_v63 = vmax.f32 %v1050_v34, %v3114_v13  ;;  %v1299_v53 = vmin.f32 %v1050_v34, %v3114_v13  ;;  %v523_v41 = vadd.f32 %v3108_v7, %v522_v9  ;;  %v2865_v44 = vmul.f32 -0.75, %v539_v25 }
 0x1ca   : > { %1762 = vlog2.f32 %v611_v22  ;;  %v573_v26 = vmul.f32 0.6931472, %v1757_v40  ;;  %v2875_v17 = vmul.f32 -0.25, %v595_v15  ;;  %v534_v20 = vmul.f32 %v2804_v21, %v2804_v21 }
 0x1cb   : > { %1764 = vlog2.f32 %v563_v42  ;;  %v1096_v49 = vsub.f32 %v1039_v16, %v1088_v63  ;;  %v1307_v31 = vsub.f32 %v1291_v1, %v1299_v53  ;;  %v590_v3 = vmul.f32 %v550_v52, %v550_v52 }
 0x1cc   : > { %v2882_v19 = vsel %vm2825_vm13, %v2788_v14, %v512_v6  ;;  %v1759_v50 = vpop.eup %1758  ;;  %v1202_v23 = vmax.f32 %v3121_v48, 0.0  ;;  %v1347_v43 = vmax.f32 %v3122_v51, 0.0  ;;  %v2886_v27 = vmul.f32 %v621_v24, %v601_v59  ;;  %v3123_v14 = vld [vmem:[#allocation12_spill] sm:$0xff] }
 0x1cd   : > { %v1104_v18 = vmax.f32 %v1096_v49, 0.0  ;;  %v1315_v4 = vmax.f32 %v1307_v31, 0.0  ;;  %v560_v8 = vadd.f32 1e-06, %v2800_v37  ;;  %v608_v21 = vadd.f32 1e-06, %v3106_v29 }
 0x1ce   : > { %v1761_v10 = vpop.eup %1760  ;;  %v527_v52 = vsel %vm2871_vm0, %v3108_v7, %v523_v41  ;;  %v1042_v0 = vmin.f32 %v3123_v14, %v3116_v47  ;;  %v1259_v6 = vadd.f32 %v2654_v5, %v1221_v33  ;;  %v1294_v59 = vmax.f32 %v3123_v14, %v3116_v47  ;;  %v3125_v49 = vld [vmem:[#allocation27_spill] sm:$0xff] }
 0x1cf   : > { %v1210_v56 = vmul.f32 %v1202_v23, %v1104_v18  ;;  %v1355_v38 = vmul.f32 %v1347_v43, %v1315_v4  ;;  %v542_v35 = vmul.f32 -0.75, %v534_v20  ;;  %v598_v54 = vmul.f32 -0.25, %v590_v3  ;;  %v1236_v60 = vpop.permute.xlu1 %1235  ;;  %v3126_v43 = vld [vmem:[#allocation14_spill] sm:$0xff] }
 0x1d0   : > { %v2896_v46 = vpop.eup %1762  ;;  %v2901_v29 = vsub.f32 1.0, %v2882_v19  ;;  %v1065_v9 = vpop.permute.xlu0 %1064  ;;  %v2909_v40 = vsel %vm2847_vm14, %v531_v39, %v527_v52  ;;  %v567_v15 = vmul.f32 0.6931472, %v1761_v10  ;;  %v615_v34 = vmul.f32 0.6931472, %v1759_v50  ;;  %v3124_v39 = vld [vmem:[#allocation26_spill] sm:$0xff] }
 0x1d1   : > { %v2903_v25 = vpop.eup %1764  ;;  %v1267_v7 = vsub.f32 %v1259_v6, %v1210_v56  ;;  %1766 = vrcp.f32 %v1355_v38  ;;  %v1091_v22 = vmax.f32 %v1065_v9, %v3114_v13  ;;  %v1302_v42 = vmin.f32 %v1065_v9, %v3114_v13 }
 0x1d2   : > { %v612_v16 = vadd.f32 1e-06, %v2882_v19  ;;  %v2913_v24 = vmul.f32 %v573_v26, %v2841_v30  ;;  %v592_v41 = vmul.f32 %v2800_v37, %v2800_v37  ;;  %v564_v33 = vadd.f32 1e-06, %v2901_v29 }
 0x1d3   : > { %1768 = vrcp.f32 %v1267_v7  ;;  %v1363_v1 = vsub.f32 %v1355_v38, %v1267_v7  ;;  %v1099_v63 = vsub.f32 %v1042_v0, %v1091_v22  ;;  %v1310_v53 = vsub.f32 %v1294_v59, %v1302_v42 }
 0x1d4   : > { %1770 = vlog2.f32 %v560_v8  ;;  %v1205_v12 = vmax.f32 %v3124_v39, 0.0  ;;  %v1350_v31 = vmax.f32 %v3125_v49, 0.0  ;;  %v2921_v50 = vsub.f32 1.0, %v2909_v40 }
 0x1d5   : > { %v1107_v20 = vmax.f32 %v1099_v63, 0.0  ;;  %v1318_v3 = vmax.f32 %v1310_v53, 0.0  ;;  %1772 = vlog2.f32 %v608_v21  ;;  %v582_v48 = vmul.f32 %v567_v15, %v542_v35 }
 0x1d6   : > { %v630_v30 = vmul.f32 %v615_v34, %v598_v54  ;;  %1774 = vlog2.f32 %v612_v16  ;;  %v1262_v23 = vadd.f32 %v2654_v5, %v1236_v60  ;;  %v1045_v18 = vmin.f32 %v3126_v43, %v3116_v47 }
 0x1d7   : > { %v1767_v26 = vpop.eup %1766  ;;  %v1213_v37 = vmul.f32 %v1205_v12, %v1107_v20  ;;  %v1358_v51 = vmul.f32 %v1350_v31, %v1318_v3  ;;  %v1297_v4 = vmax.f32 %v3126_v43, %v3116_v47  ;;  %1776 = vlog2.f32 %v564_v33 }
 0x1d8   : > { %v1379_v10 = vmul.f32 %v1767_v26, %v1363_v1  ;;  %v1080_v8 = vpop.permute.xlu0 %1079  ;;  %v565_v38 = vadd.f32 1e-06, %v2921_v50  ;;  %v613_v59 = vadd.f32 1e-06, %v2909_v40  ;;  %v638_v35 = vsub.f32 %v630_v30, %v582_v48 }
 0x1d9   : > { %v1769_v21 = vpop.eup %1768  ;;  %v1270_v52 = vsub.f32 %v1262_v23, %v1213_v37  ;;  %1778 = vrcp.f32 %v1358_v51  ;;  %v1094_v14 = vmax.f32 %v1080_v8, %v3114_v13  ;;  %v1305_v0 = vmin.f32 %v1080_v8, %v3114_v13  ;;  %v1251_v13 = vpop.permute.xlu2 %1250  ;;  %v3127_v8 = vld [vmem:[#allocation5_spill] sm:$0xff] }
 0x1da   : > { %v1771_v6 = vpop.eup %1770  ;;  %v1283_v54 = vmul.f32 %v1769_v21, %v1210_v56  ;;  %v641_v42 = vsub.f32 %v2886_v27, %v2913_v24  ;;  %v600_v15 = vmul.f32 -0.25, %v592_v41  ;;  %v540_v34 = vmul.f32 %v2882_v19, %v2882_v19 }
 0x1db   : > { %1780 = vrcp.f32 %v1270_v52  ;;  %v1366_v9 = vsub.f32 %v1358_v51, %v1270_v52  ;;  %v1102_v47 = vsub.f32 %v1045_v18, %v1094_v14  ;;  %v1313_v7 = vsub.f32 %v1297_v4, %v1305_v0  ;;  %v1773_v22 = vpop.eup %1772 }
 0x1dc   : > { %v1387_v16 = vsub.f32 %v1283_v54, %v1379_v10  ;;  %v1775_v1 = vpop.eup %1774  ;;  %v1208_v63 = vmax.f32 %v2640_v2, 0.0  ;;  %v1353_v53 = vmax.f32 %v2645_v62, 0.0  ;;  %1782 = vlog2.f32 %v565_v38 }
 0x1dd   : > { %v1110_v56 = vmax.f32 %v1102_v47, 0.0  ;;  %v1321_v33 = vmax.f32 %v1313_v7, 0.0  ;;  %v1777_v60 = vpop.eup %1776  ;;  %v1403_v39 = vadd.f32 %v2672_v11, %v638_v35  ;;  %v596_v27 = vmul.f32 %v2901_v29, %v2901_v29 }
 0x1de   : > { %v1395_v24 = vsub.f32 0.0, %v1387_v16  ;;  %1784 = vlog2.f32 %v613_v59  ;;  %v1265_v19 = vadd.f32 %v2654_v5, %v1251_v13  ;;  %v571_v2 = vmul.f32 0.6931472, %v1771_v6 }
 0x1df   : > { %v1779_v41 = vpop.eup %1778  ;;  %v1216_v12 = vmul.f32 %v1208_v63, %v1110_v56  ;;  %v1361_v49 = vmul.f32 %v1353_v53, %v1321_v33  ;;  %1786 = vrcp.f32 %v2705_v36  ;;  %v548_v48 = vmul.f32 -0.75, %v540_v34 }
 0x1e0   : > { %v1411_v62 = vadd.f32 %v1403_v39, %v1395_v24  ;;  %v1382_v31 = vmul.f32 %v1779_v41, %v1366_v9  ;;  %v1231_v20 = vpop.permute.xlu0 %1230  ;;  %v579_v30 = vmul.f32 0.6931472, %v1777_v60  ;;  %v604_v26 = vmul.f32 -0.25, %v596_v27 }
 0x1e1   : > { %v1781_v3 = vpop.eup %1780  ;;  %v1273_v11 = vsub.f32 %v1265_v19, %v1216_v12  ;;  %1788 = vrcp.f32 %v1361_v49  ;;  %v1261_v29 = vadd.f32 %v2654_v5, %v1231_v20  ;;  %v627_v23 = vmul.f32 0.6931472, %v1775_v1 }
 0x1e2   : > { %1419 = vst [vmem:[%s2790_s7] sm:$0xff] %v1411_v62  ;;  %v1286_v51 = vmul.f32 %v1781_v3, %v1213_v37  ;;  %v619_v43 = vmul.f32 0.6931472, %v1773_v22  ;;  %v1783_v10 = vpop.eup %1782  ;;  %v1406_v21 = vadd.f32 %v3127_v8, %v641_v42  ;;  %v625_v52 = vmul.f32 0.6931472, %v2896_v46 }
 0x1e3   : > { %1790 = vrcp.f32 %v1273_v11  ;;  %v1369_v18 = vsub.f32 %v1361_v49, %v1273_v11  ;;  %v1269_v4 = vsub.f32 %v1261_v29, %v2708_v55  ;;  %v577_v38 = vmul.f32 0.6931472, %v2903_v25 }
 0x1e4   : > { %1792 = vrcp.f32 %v2851_v28  ;;  %v1390_v14 = vsub.f32 %v1286_v51, %v1382_v31  ;;  %v1246_v0 = vpop.permute.xlu1 %1245  ;;  %v1785_v6 = vpop.eup %1784  ;;  %v541_v54 = vmul.f32 %v2909_v40, %v2909_v40  ;;  %v588_v9 = vmul.f32 %v579_v30, %v548_v48  ;;  %v3128_v48 = vld [vmem:[#allocation7_spill] sm:$0xff] }
 0x1e5   : > { %1794 = vrcp.f32 %v1269_v4  ;;  %v1365_v37 = vsub.f32 %v2705_v36, %v1269_v4  ;;  %v1264_v59 = vadd.f32 %v2654_v5, %v1246_v0  ;;  %v1787_v35 = vpop.eup %1786  ;;  %v636_v47 = vmul.f32 %v627_v23, %v604_v26 }
 0x1e6   : > { %v1398_v7 = vsub.f32 0.0, %v1390_v14  ;;  %v584_v22 = vmul.f32 %v571_v2, %v2856_v61  ;;  %v632_v42 = vmul.f32 %v619_v43, %v600_v15  ;;  %v597_v36 = vmul.f32 %v2921_v50, %v2921_v50  ;;  %v3130_v14 = vld [vmem:[#allocation9_spill] sm:$0xff] }
 0x1e7   : > { %v1789_v46 = vpop.eup %1788  ;;  %v1381_v34 = vmul.f32 %v1787_v35, %v1365_v37  ;;  %v1272_v25 = vsub.f32 %v1264_v59, %v2853_v57  ;;  %1796 = vrcp.f32 %v2675_v58  ;;  %v635_v63 = vmul.f32 %v625_v52, %v2875_v17 }
 0x1e8   : > { %v1414_v13 = vadd.f32 %v1406_v21, %v1398_v7  ;;  %v1385_v16 = vmul.f32 %v1789_v46, %v1369_v18  ;;  %v1256_v1 = vpop.permute.xlu0 %1255  ;;  %v587_v56 = vmul.f32 %v577_v38, %v2865_v44  ;;  %v549_v33 = vmul.f32 -0.75, %v541_v54  ;;  %v3129_v18 = vld [vmem:[#allocation6_spill] sm:$0xff] }
 0x1e9   : > { %v1791_v40 = vpop.eup %1790  ;;  %1798 = vrcp.f32 %v1272_v25  ;;  %v1368_v53 = vsub.f32 %v2851_v28, %v1272_v25  ;;  %v1266_v61 = vadd.f32 %v2654_v5, %v1256_v1  ;;  %v644_v60 = vsub.f32 %v636_v47, %v588_v9 }
 0x1ea   : > { %v1793_v15 = vpop.eup %1792  ;;  %1422 = vst [vmem:[%s2790_s7 + $0x18] sm:$0xff] %v1414_v13  ;;  %v1289_v50 = vmul.f32 %v1791_v40, %v1216_v12  ;;  %v640_v27 = vsub.f32 %v632_v42, %v584_v22  ;;  %v581_v24 = vmul.f32 0.6931472, %v1783_v10  ;;  %v605_v49 = vmul.f32 -0.25, %v597_v36 }
 0x1eb   : > { %v1795_v39 = vpop.eup %1794  ;;  %v1384_v41 = vmul.f32 %v1793_v15, %v1368_v53  ;;  %v1274_v19 = vsub.f32 %v1266_v61, %v2678_v45  ;;  %v629_v17 = vmul.f32 0.6931472, %v1785_v6  ;;  %v1409_v62 = vadd.f32 %v2761_v32, %v644_v60 }
 0x1ec   : > { %v1393_v2 = vsub.f32 %v1289_v50, %v1385_v16  ;;  %v1285_v28 = vmul.f32 %v1795_v39, %v2708_v55  ;;  %v643_v3 = vsub.f32 %v635_v63, %v587_v56  ;;  %v1405_v11 = vadd.f32 %v3128_v48, %v640_v27 }
 0x1ed   : > { %1800 = vrcp.f32 %v1274_v19  ;;  %v1370_v5 = vsub.f32 %v2675_v58, %v1274_v19  ;;  %v1797_v44 = vpop.eup %1796  ;;  %v589_v29 = vmul.f32 %v581_v24, %v549_v33  ;;  %v637_v26 = vmul.f32 %v629_v17, %v605_v49 }
 0x1ee   : > { %v1401_v12 = vsub.f32 0.0, %v1393_v2  ;;  %v1389_v31 = vsub.f32 %v1285_v28, %v1381_v34  ;;  %v1408_v4 = vadd.f32 %v3129_v18, %v643_v3 }
 0x1ef   : > { %v1799_v20 = vpop.eup %1798  ;;  %v1386_v30 = vmul.f32 %v1797_v44, %v1370_v5  ;;  %v645_v10 = vsub.f32 %v637_v26, %v589_v29 }
 0x1f0   : > { %v1417_v23 = vadd.f32 %v1409_v62, %v1401_v12  ;;  %v1397_v55 = vsub.f32 0.0, %v1389_v31  ;;  %v1288_v51 = vmul.f32 %v1799_v20, %v2853_v57 }
 0x1f1   : > { %v1410_v0 = vadd.f32 %v3130_v14, %v645_v10 }
 0x1f2   : > { %1425 = vst [vmem:[%s2790_s7 + $0x30] sm:$0xff] %v1417_v23  ;;  %v1413_v58 = vadd.f32 %v1405_v11, %v1397_v55  ;;  %v1392_v32 = vsub.f32 %v1288_v51, %v1384_v41 }
 0x1f3   : > { %v1801_v43 = vpop.eup %1800 }
 0x1f4   : > { %1421 = vst [vmem:[%s2790_s7 + $0x10] sm:$0xff] %v1413_v58  ;;  %v1400_v8 = vsub.f32 0.0, %v1392_v32  ;;  %v1290_v21 = vmul.f32 %v1801_v43, %v2678_v45 }
 0x1f6   : > { %v1416_v57 = vadd.f32 %v1408_v4, %v1400_v8  ;;  %v1394_v52 = vsub.f32 %v1290_v21, %v1386_v30 }
 0x1f8   : > { %1424 = vst [vmem:[%s2790_s7 + $0x28] sm:$0xff] %v1416_v57  ;;  %v1402_v6 = vsub.f32 0.0, %v1394_v52 }
 0x1fa   : > { %v1418_v38 = vadd.f32 %v1410_v0, %v1402_v6 }
 0x1fc   : > { %1426 = vst [vmem:[%s2790_s7 + $0x38] sm:$0xff] %v1418_v38 }
 0x1fd   : > { %1829 = shalt.err (!%p1826_p5)
}
 0x1fe   : > { %s1888_s5 = smov 128   ;;  %s1889_s6 = smov 8  }
 0x1ff   : > { %1625 = dma.vmem_to_hbm [thread:$0]  (%p1955_p4), %s1443_s18, 1024, %s1445_s12, %s1428_s13, %s1888_s5, %s1888_s5, %s1889_s6  }
 0x200 PF: > { %p1631_p6 = scmp.ge.s32.totalorder %s1880_s20, 2  ;;  %s1459_s7 = sand.u32 1, %s1860_s15  }
 0x201   : > { %s1460_s8 = scalar_lea.sflag [#allocation3], %s1459_s7 }
 0x202   : > { %p1628_p7 = pnand %p1631_p6, %p1962_p8 }
 0x204   : > { %p1629_p9 = pneg %p1628_p7 }
 0x206   : > { %1855 = dma.done.wait (%p1629_p9), %s1460_s8, 1024  }
 0x207   : > { %1857 = vsyncadd (%p1629_p9), %s1460_s8, 4294966272  ;;  %s17_s20 = sadd.s32 1, %s1880_s20   ;;  %s3131_s15 = smov %s1864_s16 }
 0x208   : > { %p14_p10 = scmp.ge.s32.totalorder %s17_s20, 4   ;;  %s3132_s16 = smov %s1868_s17 }
 0x209   : > { %s3133_s17 = smov %s1968_s28  ;;  %s3134_s18 = smov %s1876_s19 }
 0x20a   : > { %s3135_s19 = smov %s3137_s23  ;;  %16 = sbr.rel (!%p14_p10) target bundleno = 4 (0x4), region = 80 }
 0x20f   :  { %1466 = vsyncpa [#allocation3], 1 }
 0x210   :  { %1468 = vsyncpa [#allocation3 + $0x1], 1 }

</bundles_post_ra>
